<compile_context>
chip_gen: v5e
topology: v5e:2x2
jax: 0.10.0
libtpu: 0.0.40
codegen_flags: <defaults>
</compile_context>

<pallas_src>
import functools

import jax
import jax.numpy as jnp
from jax.experimental import pallas as pl
from jax.experimental.pallas import tpu as pltpu

# ---------------- model configuration (small, consistent with BERT-NLI) -----
VOCAB = 64          # synthetic vocab
TYPE_VOCAB = 2      # sentence A / sentence B
MAX_POS = 16
SEQ = 8             # stands in for length=384
HIDDEN = 32
N_HEADS = 4
HEAD_DIM = HIDDEN // N_HEADS
INTERMEDIATE = 128
N_LAYERS = 2
N_CLASSES = 3       # entailment / neutral / contradiction
CLS_PAD = 128       # lane-dense classifier output width (sliced to 3 outside)
LN_EPS = 1e-12
BS = 128            # self.bs micro-batch in the torch module


# ---------------- in-kernel math helpers -------------------------------------
def _layernorm(x, g, b):
    mu = jnp.mean(x, axis=-1, keepdims=True)
    xc = x - mu
    var = jnp.mean(xc * xc, axis=-1, keepdims=True)
    return xc * jax.lax.rsqrt(var + LN_EPS) * g + b


def _gelu(y):
    # TODO(synk): HF BERT default is exact erf-GELU; tanh approximation used here.
    return 0.5 * y * (1.0 + jnp.tanh(0.7978845608028654 * (y + 0.044715 * y * y * y)))


# ---------------- the single fused Pallas kernel -----------------------------
def _fused_nli_kernel(emb_ref, mask_ref,
                      emb_ln_g_ref, emb_ln_b_ref,
                      wqkv_ref, bqkv_ref, wo_ref, bo_ref,
                      ln1g_ref, ln1b_ref, w1_ref, b1_ref,
                      w2_ref, b2_ref, ln2g_ref, ln2b_ref,
                      wp_ref, bp_ref, wc_ref, bc_ref,
                      o_ref, *, b_blk, scale):
    """Whole BERT-NLI forward for one batch block of b_blk sequences."""
    M = b_blk * SEQ
    x = emb_ref[...]                                     # [b_blk, S, H] f32
    # Additive attention bias built in-kernel from the padding mask.
    bias = (1.0 - mask_ref[...]) * -1e9                  # [b_blk, 1, S]

    # Embedding LayerNorm (fused; no standalone pallas_call).
    h = _layernorm(x.reshape(M, HIDDEN), emb_ln_g_ref[...], emb_ln_b_ref[...])

    for L in range(N_LAYERS):                            # static unroll: layers
        h_bf = h.astype(jnp.bfloat16)                    # one cast per layer

        # Fused QKV projection: a single [M, H] @ [H, 3H] matmul.
        qkv = jnp.dot(h_bf, wqkv_ref[L],
                      preferred_element_type=jnp.float32) + bqkv_ref[L]
        qkv = qkv.astype(jnp.bfloat16).reshape(b_blk, SEQ, 3 * HIDDEN)

        ctx_heads = []
        for hd in range(N_HEADS):                        # static unroll: heads
            q = qkv[:, :, hd * HEAD_DIM:(hd + 1) * HEAD_DIM]
            k = qkv[:, :, HIDDEN + hd * HEAD_DIM:HIDDEN + (hd + 1) * HEAD_DIM]
            v = qkv[:, :, 2 * HIDDEN + hd * HEAD_DIM:2 * HIDDEN + (hd + 1) * HEAD_DIM]
            s = jnp.einsum('bqd,bkd->bqk', q, k,
                           preferred_element_type=jnp.float32) * scale + bias
            s = s - jnp.max(s, axis=-1, keepdims=True)
            p = jnp.exp(s)
            p = p * pl.reciprocal(jnp.sum(p, axis=-1, keepdims=True), approx=True)
            ctx_heads.append(
                jnp.einsum('bqk,bkd->bqd', p.astype(jnp.bfloat16), v,
                           preferred_element_type=jnp.float32))   # [b_blk, S, Dh]

        # All-head context -> one output-projection matmul.
        ctx = jnp.concatenate(ctx_heads, axis=-1).reshape(M, HIDDEN)
        attn = jnp.dot(ctx.astype(jnp.bfloat16), wo_ref[L],
                       preferred_element_type=jnp.float32) + bo_ref[L]

        # residual + LayerNorm
        h = _layernorm(attn + h, ln1g_ref[L], ln1b_ref[L])

        # FFN: gelu(h W1 + b1) W2 + b2, residual + LayerNorm
        ff = jnp.dot(h.astype(jnp.bfloat16), w1_ref[L],
                     preferred_element_type=jnp.float32) + b1_ref[L]
        ff = _gelu(ff)
        ff = jnp.dot(ff.astype(jnp.bfloat16), w2_ref[L],
                     preferred_element_type=jnp.float32) + b2_ref[L]
        h = _layernorm(ff + h, ln2g_ref[L], ln2b_ref[L])

    # Pooler: tanh(W * h[CLS] + b); dropout is identity in eval();
    # classifier output lane-padded to 128 columns (lane-dense store).
    cls = h.reshape(b_blk, SEQ, HIDDEN)[:, 0, :]          # [b_blk, H]
    pooled = jnp.tanh(jnp.dot(cls.astype(jnp.bfloat16), wp_ref[...],
                              preferred_element_type=jnp.float32) + bp_ref[...])
    o_ref[0] = jnp.dot(pooled.astype(jnp.bfloat16), wc_ref[...],
                       preferred_element_type=jnp.float32) + bc_ref[...]


def _bcast_spec(arr):
    """Full-array block replicated across the batch-block grid axis."""
    zeros = (0,) * arr.ndim
    return pl.BlockSpec(arr.shape, lambda b, z=zeros: z)


def fused_nli(emb, mask, params, n_blocks, b_blk):
    """emb: [n_blocks*b_blk, S, H] f32, mask: [n_blocks*b_blk, 1, S] f32.

    Returns lane-dense logits [n_blocks, b_blk, CLS_PAD]."""
    ws = [params[k] for k in (
        "emb_ln_g", "emb_ln_b", "wqkv", "bqkv", "wo", "bo",
        "ln1_g", "ln1_b", "w1", "b1", "w2", "b2", "ln2_g", "ln2_b",
        "pooler_w", "pooler_b", "cls_w", "cls_b")]
    in_specs = [
        pl.BlockSpec((b_blk, SEQ, HIDDEN), lambda b: (b, 0, 0)),
        pl.BlockSpec((b_blk, 1, SEQ), lambda b: (b, 0, 0)),
    ] + [_bcast_spec(w) for w in ws]
    return pl.pallas_call(
        functools.partial(_fused_nli_kernel, b_blk=b_blk,
                          scale=1.0 / (HEAD_DIM ** 0.5)),
        out_shape=jax.ShapeDtypeStruct((n_blocks, b_blk, CLS_PAD), jnp.float32),
        grid=(n_blocks,),
        in_specs=in_specs,
        out_specs=pl.BlockSpec((1, b_blk, CLS_PAD), lambda b: (b, 0, 0)),
        compiler_params=pltpu.CompilerParams(
            dimension_semantics=("parallel",)),
    )(emb, mask, *ws)


# ---------------- parameter construction (deterministic, synthetic) ---------
def init_params(key):
    keys = iter(jax.random.split(key, 64))

    def dense(i, o):
        return jax.random.normal(next(keys), (i, o), jnp.float32) * 0.02

    p = {
        "tok_emb": dense(VOCAB, HIDDEN),
        "pos_emb": dense(MAX_POS, HIDDEN),
        "typ_emb": dense(TYPE_VOCAB, HIDDEN),
        "emb_ln_g": jnp.ones((1, HIDDEN), jnp.float32),
        "emb_ln_b": jnp.zeros((1, HIDDEN), jnp.float32),
        "pooler_w": dense(HIDDEN, HIDDEN).astype(jnp.bfloat16),
        "pooler_b": jnp.zeros((1, HIDDEN), jnp.float32),
    }
    wc = dense(HIDDEN, N_CLASSES)    # self.bertnli.linear (cls == 'linear')
    p["cls_w"] = (jnp.zeros((HIDDEN, CLS_PAD), jnp.float32)
                  .at[:, :N_CLASSES].set(wc).astype(jnp.bfloat16))
    p["cls_b"] = jnp.zeros((1, CLS_PAD), jnp.float32)

    wqkv, wo, w1, w2 = [], [], [], []
    for _ in range(N_LAYERS):
        wq, wk, wv, wol = (dense(HIDDEN, HIDDEN) for _ in range(4))
        # fused [H, 3H] layout: cols = [q_h0|q_h1|...|k_h0|...|v_h0|...]
        wqkv.append(jnp.concatenate([wq, wk, wv], axis=1))
        wo.append(wol)
        w1.append(dense(HIDDEN, INTERMEDIATE))
        w2.append(dense(INTERMEDIATE, HIDDEN))

    # Per-layer weights stacked on a leading [N_LAYERS, ...] axis; the kernel
    # indexes the leading axis with a static layer id.
    p["wqkv"] = jnp.stack(wqkv).astype(jnp.bfloat16)                 # [L, H, 3H]
    p["bqkv"] = jnp.zeros((N_LAYERS, 1, 3 * HIDDEN), jnp.float32)
    p["wo"] = jnp.stack(wo).astype(jnp.bfloat16)                     # [L, H, H]
    p["bo"] = jnp.zeros((N_LAYERS, 1, HIDDEN), jnp.float32)
    p["ln1_g"] = jnp.ones((N_LAYERS, 1, HIDDEN), jnp.float32)
    p["ln1_b"] = jnp.zeros((N_LAYERS, 1, HIDDEN), jnp.float32)
    p["w1"] = jnp.stack(w1).astype(jnp.bfloat16)                     # [L, H, I]
    p["b1"] = jnp.zeros((N_LAYERS, 1, INTERMEDIATE), jnp.float32)
    p["w2"] = jnp.stack(w2).astype(jnp.bfloat16)                     # [L, I, H]
    p["b2"] = jnp.zeros((N_LAYERS, 1, HIDDEN), jnp.float32)
    p["ln2_g"] = jnp.ones((N_LAYERS, 1, HIDDEN), jnp.float32)
    p["ln2_b"] = jnp.zeros((N_LAYERS, 1, HIDDEN), jnp.float32)
    return p


# ---------------- forward pass (NLI.forward semantics) ----------------------
@jax.jit
def bert_nli_forward(params, input_ids, token_type_ids, attention_mask):
    """input_ids/token_type_ids/attention_mask: [B, S] int32 -> logits [B, 3]."""
    B, S = input_ids.shape

    # --- embeddings (gather is XLA glue; LayerNorm happens inside the kernel) ---
    pos_ids = jnp.arange(S, dtype=jnp.int32)
    emb = (jnp.take(params["tok_emb"], input_ids, axis=0)
           + jnp.take(params["pos_emb"], pos_ids, axis=0)[None, :, :]
           + jnp.take(params["typ_emb"], token_type_ids, axis=0))
    mask = attention_mask.astype(jnp.float32).reshape(B, 1, S)

    # Batch blocking: >= 2 "parallel" grid steps (keeps both v7x TensorCores
    # busy) while amortizing the ~0.35 us per-grid-step overhead over a block.
    n_blocks = 1 if B == 1 else 2
    b_blk = -(-B // n_blocks)
    b_pad = n_blocks * b_blk
    if b_pad != B:
        emb = jnp.pad(emb, ((0, b_pad - B), (0, 0), (0, 0)))
        mask = jnp.pad(mask, ((0, b_pad - B), (0, 0), (0, 0)))

    # --- the single fused Pallas kernel (emb-LN + encoder + pooler + cls) ---
    logits_pad = fused_nli(emb, mask, params, n_blocks, b_blk)  # [nb, b_blk, 128]
    logits_pad = logits_pad.reshape(b_pad, CLS_PAD)
    return logits_pad[:B, :N_CLASSES]                           # [B, 3]


def nli_forward(params, input_ids, token_type_ids, attention_mask, bs=BS):
    """Mirrors NLI.forward micro-batching over pairs (bs=128 in torch)."""
    N = input_ids.shape[0]
    outs = []
    for i in range(0, N, bs):
        outs.append(bert_nli_forward(params,
                                     input_ids[i:i + bs],
                                     token_type_ids[i:i + bs],
                                     attention_mask[i:i + bs]))
    return jnp.concatenate(outs, axis=0)


# ---------------- driver -----------------------------------------------------
if __name__ == "__main__":
    key = jax.random.PRNGKey(0)
    pkey, tkey = jax.random.split(key)
    params = init_params(pkey)

    # Synthetic "tokenized" sentence pairs: 2 pairs, seq length 8.
    N_PAIRS = 2
    input_ids = jax.random.randint(tkey, (N_PAIRS, SEQ), 1, VOCAB, dtype=jnp.int32)
    input_ids = input_ids.at[:, 0].set(0)                  # [CLS]-like token
    token_type_ids = jnp.concatenate(
        [jnp.zeros((N_PAIRS, SEQ // 2), jnp.int32),
         jnp.ones((N_PAIRS, SEQ // 2), jnp.int32)], axis=1)
    attention_mask = jnp.ones((N_PAIRS, SEQ), jnp.int32)
    attention_mask = attention_mask.at[1, SEQ - 1].set(0)  # one padded position

    logits = nli_forward(params, input_ids, token_type_ids, attention_mask)
    logits = jax.block_until_ready(logits)
    assert logits.shape == (N_PAIRS, N_CLASSES)
    assert bool(jnp.all(jnp.isfinite(logits)))
    print("KERNEL_OK")
</pallas_src>

<mosaic_0001>
module attributes {stable_mosaic.version = 11 : i64} {
  func.func @_fused_nli_kernel(%arg0: i32, %arg1: memref<1x8x32xf32, #tpu.memory_space<vmem>>, %arg2: memref<1x1x8xf32, #tpu.memory_space<vmem>>, %arg3: memref<1x32xf32, #tpu.memory_space<vmem>>, %arg4: memref<1x32xf32, #tpu.memory_space<vmem>>, %arg5: memref<2x32x96xbf16, #tpu.memory_space<vmem>>, %arg6: memref<2x1x96xf32, #tpu.memory_space<vmem>>, %arg7: memref<2x32x32xbf16, #tpu.memory_space<vmem>>, %arg8: memref<2x1x32xf32, #tpu.memory_space<vmem>>, %arg9: memref<2x1x32xf32, #tpu.memory_space<vmem>>, %arg10: memref<2x1x32xf32, #tpu.memory_space<vmem>>, %arg11: memref<2x32x128xbf16, #tpu.memory_space<vmem>>, %arg12: memref<2x1x128xf32, #tpu.memory_space<vmem>>, %arg13: memref<2x128x32xbf16, #tpu.memory_space<vmem>>, %arg14: memref<2x1x32xf32, #tpu.memory_space<vmem>>, %arg15: memref<2x1x32xf32, #tpu.memory_space<vmem>>, %arg16: memref<2x1x32xf32, #tpu.memory_space<vmem>>, %arg17: memref<32x32xbf16, #tpu.memory_space<vmem>>, %arg18: memref<1x32xf32, #tpu.memory_space<vmem>>, %arg19: memref<32x128xbf16, #tpu.memory_space<vmem>>, %arg20: memref<1x128xf32, #tpu.memory_space<vmem>>, %arg21: memref<1x1x128xf32, #tpu.memory_space<vmem>>) attributes {dimension_semantics = [#tpu.dimension_semantics<parallel>], iteration_bounds = array<i64: 2>, scalar_prefetch = 0 : i64, scratch_operands = 0 : i64, tpu.core_type = #tpu.core_type<tc>, window_params = [{transform_indices = @transform_0, window_bounds = array<i64: 1, 8, 32>}, {transform_indices = @transform_1, window_bounds = array<i64: 1, 1, 8>}, {pipeline_mode = #tpu.pipeline_mode<synchronous>, transform_indices = @transform_2, window_bounds = array<i64: 1, 32>}, {pipeline_mode = #tpu.pipeline_mode<synchronous>, transform_indices = @transform_3, window_bounds = array<i64: 1, 32>}, {pipeline_mode = #tpu.pipeline_mode<synchronous>, transform_indices = @transform_4, window_bounds = array<i64: 2, 32, 96>}, {pipeline_mode = #tpu.pipeline_mode<synchronous>, transform_indices = @transform_5, window_bounds = array<i64: 2, 1, 96>}, {pipeline_mode = #tpu.pipeline_mode<synchronous>, transform_indices = @transform_6, window_bounds = array<i64: 2, 32, 32>}, {pipeline_mode = #tpu.pipeline_mode<synchronous>, transform_indices = @transform_7, window_bounds = array<i64: 2, 1, 32>}, {pipeline_mode = #tpu.pipeline_mode<synchronous>, transform_indices = @transform_8, window_bounds = array<i64: 2, 1, 32>}, {pipeline_mode = #tpu.pipeline_mode<synchronous>, transform_indices = @transform_9, window_bounds = array<i64: 2, 1, 32>}, {pipeline_mode = #tpu.pipeline_mode<synchronous>, transform_indices = @transform_10, window_bounds = array<i64: 2, 32, 128>}, {pipeline_mode = #tpu.pipeline_mode<synchronous>, transform_indices = @transform_11, window_bounds = array<i64: 2, 1, 128>}, {pipeline_mode = #tpu.pipeline_mode<synchronous>, transform_indices = @transform_12, window_bounds = array<i64: 2, 128, 32>}, {pipeline_mode = #tpu.pipeline_mode<synchronous>, transform_indices = @transform_13, window_bounds = array<i64: 2, 1, 32>}, {pipeline_mode = #tpu.pipeline_mode<synchronous>, transform_indices = @transform_14, window_bounds = array<i64: 2, 1, 32>}, {pipeline_mode = #tpu.pipeline_mode<synchronous>, transform_indices = @transform_15, window_bounds = array<i64: 2, 1, 32>}, {pipeline_mode = #tpu.pipeline_mode<synchronous>, transform_indices = @transform_16, window_bounds = array<i64: 32, 32>}, {pipeline_mode = #tpu.pipeline_mode<synchronous>, transform_indices = @transform_17, window_bounds = array<i64: 1, 32>}, {pipeline_mode = #tpu.pipeline_mode<synchronous>, transform_indices = @transform_18, window_bounds = array<i64: 32, 128>}, {pipeline_mode = #tpu.pipeline_mode<synchronous>, transform_indices = @transform_19, window_bounds = array<i64: 1, 128>}, {transform_indices = @transform_20, window_bounds = array<i64: 1, 1, 128>}]} {
    %c0 = arith.constant 0 : index
    %c0_0 = arith.constant 0 : index
    %c0_1 = arith.constant 0 : index
    %0 = vector.load %arg1[%c0, %c0_0, %c0_1] : memref<1x8x32xf32, #tpu.memory_space<vmem>>, vector<1x8x32xf32>
    %c0_2 = arith.constant 0 : index
    %c0_3 = arith.constant 0 : index
    %c0_4 = arith.constant 0 : index
    %1 = vector.load %arg2[%c0_2, %c0_3, %c0_4] : memref<1x1x8xf32, #tpu.memory_space<vmem>>, vector<1x1x8xf32>
    %cst = arith.constant 1.000000e+00 : f32
    %2 = vector.broadcast %cst : f32 to vector<1x1x8xf32>
    %3 = arith.subf %2, %1 : vector<1x1x8xf32>
    %cst_5 = arith.constant -1.000000e+09 : f32
    %4 = vector.broadcast %cst_5 : f32 to vector<1x1x8xf32>
    %5 = arith.mulf %3, %4 : vector<1x1x8xf32>
    %6 = vector.shape_cast %0 : vector<1x8x32xf32> to vector<8x32xf32>
    %c0_6 = arith.constant 0 : index
    %c0_7 = arith.constant 0 : index
    %7 = vector.load %arg3[%c0_6, %c0_7] : memref<1x32xf32, #tpu.memory_space<vmem>>, vector<1x32xf32>
    %c0_8 = arith.constant 0 : index
    %c0_9 = arith.constant 0 : index
    %8 = vector.load %arg4[%c0_8, %c0_9] : memref<1x32xf32, #tpu.memory_space<vmem>>, vector<1x32xf32>
    %cst_10 = arith.constant dense<0.000000e+00> : vector<8xf32>
    %9 = vector.multi_reduction <add>, %6, %cst_10 [1] : vector<8x32xf32> to vector<8xf32>
    %10 = vector.shape_cast %9 : vector<8xf32> to vector<8x1xf32>
    %cst_11 = arith.constant 3.200000e+01 : f32
    %11 = vector.broadcast %cst_11 : f32 to vector<8x1xf32>
    %12 = arith.divf %10, %11 : vector<8x1xf32>
    %13 = vector.broadcast %12 : vector<8x1xf32> to vector<8x32xf32>
    %14 = arith.subf %6, %13 : vector<8x32xf32>
    %15 = arith.mulf %14, %14 : vector<8x32xf32>
    %cst_12 = arith.constant dense<0.000000e+00> : vector<8xf32>
    %16 = vector.multi_reduction <add>, %15, %cst_12 [1] : vector<8x32xf32> to vector<8xf32>
    %17 = vector.shape_cast %16 : vector<8xf32> to vector<8x1xf32>
    %cst_13 = arith.constant 3.200000e+01 : f32
    %18 = vector.broadcast %cst_13 : f32 to vector<8x1xf32>
    %19 = arith.divf %17, %18 : vector<8x1xf32>
    %cst_14 = arith.constant 9.99999996E-13 : f32
    %20 = vector.broadcast %cst_14 : f32 to vector<8x1xf32>
    %21 = arith.addf %19, %20 : vector<8x1xf32>
    %22 = math.rsqrt %21 : vector<8x1xf32>
    %23 = vector.broadcast %22 : vector<8x1xf32> to vector<8x32xf32>
    %24 = arith.mulf %14, %23 : vector<8x32xf32>
    %25 = vector.broadcast %7 : vector<1x32xf32> to vector<8x32xf32>
    %26 = arith.mulf %24, %25 : vector<8x32xf32>
    %27 = vector.broadcast %8 : vector<1x32xf32> to vector<8x32xf32>
    %28 = arith.addf %26, %27 : vector<8x32xf32>
    %29 = arith.truncf %28 : vector<8x32xf32> to vector<8x32xbf16>
    %c0_15 = arith.constant 0 : index
    %c0_16 = arith.constant 0 : index
    %c0_17 = arith.constant 0 : index
    %30 = vector.load %arg5[%c0_15, %c0_16, %c0_17] : memref<2x32x96xbf16, #tpu.memory_space<vmem>>, vector<1x32x96xbf16>
    %31 = vector.shape_cast %30 : vector<1x32x96xbf16> to vector<32x96xbf16>
    %cst_18 = arith.constant dense<0.000000e+00> : vector<8x96xf32>
    %32 = tpu.matmul %29, %31, %cst_18 {dimension_numbers = #tpu.dot_dimension_numbers<[1], [0], [0], [1], [0, 0, 1, 1], [], []>} : vector<8x32xbf16>, vector<32x96xbf16>, vector<8x96xf32> -> vector<8x96xf32>
    %c0_19 = arith.constant 0 : index
    %c0_20 = arith.constant 0 : index
    %c0_21 = arith.constant 0 : index
    %33 = vector.load %arg6[%c0_19, %c0_20, %c0_21] : memref<2x1x96xf32, #tpu.memory_space<vmem>>, vector<1x1x96xf32>
    %34 = vector.shape_cast %33 : vector<1x1x96xf32> to vector<1x96xf32>
    %35 = vector.broadcast %34 : vector<1x96xf32> to vector<8x96xf32>
    %36 = arith.addf %32, %35 : vector<8x96xf32>
    %37 = arith.truncf %36 : vector<8x96xf32> to vector<8x96xbf16>
    %38 = vector.shape_cast %37 : vector<8x96xbf16> to vector<1x8x96xbf16>
    %39 = vector.extract_strided_slice %38 {offsets = [0, 0, 0], sizes = [1, 8, 8], strides = [1, 1, 1]} : vector<1x8x96xbf16> to vector<1x8x8xbf16>
    %40 = vector.extract_strided_slice %38 {offsets = [0, 0, 32], sizes = [1, 8, 8], strides = [1, 1, 1]} : vector<1x8x96xbf16> to vector<1x8x8xbf16>
    %41 = vector.extract_strided_slice %38 {offsets = [0, 0, 64], sizes = [1, 8, 8], strides = [1, 1, 1]} : vector<1x8x96xbf16> to vector<1x8x8xbf16>
    "tpu.trace_start"() <{level = 10 : i32, message = "bqd,bkd->bqk"}> : () -> ()
    %cst_22 = arith.constant dense<0.000000e+00> : vector<1x8x8xf32>
    %42 = tpu.matmul %39, %40, %cst_22 {dimension_numbers = #tpu.dot_dimension_numbers<[2], [2], [1], [1], [0, 0, 0, 1, 1, 1], [0], [0]>} : vector<1x8x8xbf16>, vector<1x8x8xbf16>, vector<1x8x8xf32> -> vector<1x8x8xf32>
    "tpu.trace_stop"() : () -> ()
    %cst_23 = arith.constant 0.353553385 : f32
    %43 = vector.broadcast %cst_23 : f32 to vector<1x8x8xf32>
    %44 = arith.mulf %42, %43 : vector<1x8x8xf32>
    %45 = vector.broadcast %5 : vector<1x1x8xf32> to vector<1x8x8xf32>
    %46 = arith.addf %44, %45 : vector<1x8x8xf32>
    %cst_24 = arith.constant dense<0xFF800000> : vector<1x8xf32>
    %47 = vector.multi_reduction <maximumf>, %46, %cst_24 [2] : vector<1x8x8xf32> to vector<1x8xf32>
    %48 = vector.shape_cast %47 : vector<1x8xf32> to vector<1x8x1xf32>
    %49 = vector.broadcast %48 : vector<1x8x1xf32> to vector<1x8x8xf32>
    %50 = arith.subf %46, %49 : vector<1x8x8xf32>
    %51 = math.exp %50 : vector<1x8x8xf32>
    %cst_25 = arith.constant dense<0.000000e+00> : vector<1x8xf32>
    %52 = vector.multi_reduction <add>, %51, %cst_25 [2] : vector<1x8x8xf32> to vector<1x8xf32>
    %53 = vector.shape_cast %52 : vector<1x8xf32> to vector<1x8x1xf32>
    %54 = tpu.reciprocal %53 {approx = true} : vector<1x8x1xf32> -> vector<1x8x1xf32>
    %55 = vector.broadcast %54 : vector<1x8x1xf32> to vector<1x8x8xf32>
    %56 = arith.mulf %51, %55 : vector<1x8x8xf32>
    %57 = arith.truncf %56 : vector<1x8x8xf32> to vector<1x8x8xbf16>
    "tpu.trace_start"() <{level = 10 : i32, message = "bqk,bkd->bqd"}> : () -> ()
    %cst_26 = arith.constant dense<0.000000e+00> : vector<1x8x8xf32>
    %58 = tpu.matmul %57, %41, %cst_26 {dimension_numbers = #tpu.dot_dimension_numbers<[2], [1], [1], [2], [0, 0, 0, 1, 1, 2], [0], [0]>} : vector<1x8x8xbf16>, vector<1x8x8xbf16>, vector<1x8x8xf32> -> vector<1x8x8xf32>
    "tpu.trace_stop"() : () -> ()
    %59 = vector.extract_strided_slice %38 {offsets = [0, 0, 8], sizes = [1, 8, 8], strides = [1, 1, 1]} : vector<1x8x96xbf16> to vector<1x8x8xbf16>
    %60 = vector.extract_strided_slice %38 {offsets = [0, 0, 40], sizes = [1, 8, 8], strides = [1, 1, 1]} : vector<1x8x96xbf16> to vector<1x8x8xbf16>
    %61 = vector.extract_strided_slice %38 {offsets = [0, 0, 72], sizes = [1, 8, 8], strides = [1, 1, 1]} : vector<1x8x96xbf16> to vector<1x8x8xbf16>
    "tpu.trace_start"() <{level = 10 : i32, message = "bqd,bkd->bqk"}> : () -> ()
    %cst_27 = arith.constant dense<0.000000e+00> : vector<1x8x8xf32>
    %62 = tpu.matmul %59, %60, %cst_27 {dimension_numbers = #tpu.dot_dimension_numbers<[2], [2], [1], [1], [0, 0, 0, 1, 1, 1], [0], [0]>} : vector<1x8x8xbf16>, vector<1x8x8xbf16>, vector<1x8x8xf32> -> vector<1x8x8xf32>
    "tpu.trace_stop"() : () -> ()
    %cst_28 = arith.constant 0.353553385 : f32
    %63 = vector.broadcast %cst_28 : f32 to vector<1x8x8xf32>
    %64 = arith.mulf %62, %63 : vector<1x8x8xf32>
    %65 = vector.broadcast %5 : vector<1x1x8xf32> to vector<1x8x8xf32>
    %66 = arith.addf %64, %65 : vector<1x8x8xf32>
    %cst_29 = arith.constant dense<0xFF800000> : vector<1x8xf32>
    %67 = vector.multi_reduction <maximumf>, %66, %cst_29 [2] : vector<1x8x8xf32> to vector<1x8xf32>
    %68 = vector.shape_cast %67 : vector<1x8xf32> to vector<1x8x1xf32>
    %69 = vector.broadcast %68 : vector<1x8x1xf32> to vector<1x8x8xf32>
    %70 = arith.subf %66, %69 : vector<1x8x8xf32>
    %71 = math.exp %70 : vector<1x8x8xf32>
    %cst_30 = arith.constant dense<0.000000e+00> : vector<1x8xf32>
    %72 = vector.multi_reduction <add>, %71, %cst_30 [2] : vector<1x8x8xf32> to vector<1x8xf32>
    %73 = vector.shape_cast %72 : vector<1x8xf32> to vector<1x8x1xf32>
    %74 = tpu.reciprocal %73 {approx = true} : vector<1x8x1xf32> -> vector<1x8x1xf32>
    %75 = vector.broadcast %74 : vector<1x8x1xf32> to vector<1x8x8xf32>
    %76 = arith.mulf %71, %75 : vector<1x8x8xf32>
    %77 = arith.truncf %76 : vector<1x8x8xf32> to vector<1x8x8xbf16>
    "tpu.trace_start"() <{level = 10 : i32, message = "bqk,bkd->bqd"}> : () -> ()
    %cst_31 = arith.constant dense<0.000000e+00> : vector<1x8x8xf32>
    %78 = tpu.matmul %77, %61, %cst_31 {dimension_numbers = #tpu.dot_dimension_numbers<[2], [1], [1], [2], [0, 0, 0, 1, 1, 2], [0], [0]>} : vector<1x8x8xbf16>, vector<1x8x8xbf16>, vector<1x8x8xf32> -> vector<1x8x8xf32>
    "tpu.trace_stop"() : () -> ()
    %79 = vector.extract_strided_slice %38 {offsets = [0, 0, 16], sizes = [1, 8, 8], strides = [1, 1, 1]} : vector<1x8x96xbf16> to vector<1x8x8xbf16>
    %80 = vector.extract_strided_slice %38 {offsets = [0, 0, 48], sizes = [1, 8, 8], strides = [1, 1, 1]} : vector<1x8x96xbf16> to vector<1x8x8xbf16>
    %81 = vector.extract_strided_slice %38 {offsets = [0, 0, 80], sizes = [1, 8, 8], strides = [1, 1, 1]} : vector<1x8x96xbf16> to vector<1x8x8xbf16>
    "tpu.trace_start"() <{level = 10 : i32, message = "bqd,bkd->bqk"}> : () -> ()
    %cst_32 = arith.constant dense<0.000000e+00> : vector<1x8x8xf32>
    %82 = tpu.matmul %79, %80, %cst_32 {dimension_numbers = #tpu.dot_dimension_numbers<[2], [2], [1], [1], [0, 0, 0, 1, 1, 1], [0], [0]>} : vector<1x8x8xbf16>, vector<1x8x8xbf16>, vector<1x8x8xf32> -> vector<1x8x8xf32>
    "tpu.trace_stop"() : () -> ()
    %cst_33 = arith.constant 0.353553385 : f32
    %83 = vector.broadcast %cst_33 : f32 to vector<1x8x8xf32>
    %84 = arith.mulf %82, %83 : vector<1x8x8xf32>
    %85 = vector.broadcast %5 : vector<1x1x8xf32> to vector<1x8x8xf32>
    %86 = arith.addf %84, %85 : vector<1x8x8xf32>
    %cst_34 = arith.constant dense<0xFF800000> : vector<1x8xf32>
    %87 = vector.multi_reduction <maximumf>, %86, %cst_34 [2] : vector<1x8x8xf32> to vector<1x8xf32>
    %88 = vector.shape_cast %87 : vector<1x8xf32> to vector<1x8x1xf32>
    %89 = vector.broadcast %88 : vector<1x8x1xf32> to vector<1x8x8xf32>
    %90 = arith.subf %86, %89 : vector<1x8x8xf32>
    %91 = math.exp %90 : vector<1x8x8xf32>
    %cst_35 = arith.constant dense<0.000000e+00> : vector<1x8xf32>
    %92 = vector.multi_reduction <add>, %91, %cst_35 [2] : vector<1x8x8xf32> to vector<1x8xf32>
    %93 = vector.shape_cast %92 : vector<1x8xf32> to vector<1x8x1xf32>
    %94 = tpu.reciprocal %93 {approx = true} : vector<1x8x1xf32> -> vector<1x8x1xf32>
    %95 = vector.broadcast %94 : vector<1x8x1xf32> to vector<1x8x8xf32>
    %96 = arith.mulf %91, %95 : vector<1x8x8xf32>
    %97 = arith.truncf %96 : vector<1x8x8xf32> to vector<1x8x8xbf16>
    "tpu.trace_start"() <{level = 10 : i32, message = "bqk,bkd->bqd"}> : () -> ()
    %cst_36 = arith.constant dense<0.000000e+00> : vector<1x8x8xf32>
    %98 = tpu.matmul %97, %81, %cst_36 {dimension_numbers = #tpu.dot_dimension_numbers<[2], [1], [1], [2], [0, 0, 0, 1, 1, 2], [0], [0]>} : vector<1x8x8xbf16>, vector<1x8x8xbf16>, vector<1x8x8xf32> -> vector<1x8x8xf32>
    "tpu.trace_stop"() : () -> ()
    %99 = vector.extract_strided_slice %38 {offsets = [0, 0, 24], sizes = [1, 8, 8], strides = [1, 1, 1]} : vector<1x8x96xbf16> to vector<1x8x8xbf16>
    %100 = vector.extract_strided_slice %38 {offsets = [0, 0, 56], sizes = [1, 8, 8], strides = [1, 1, 1]} : vector<1x8x96xbf16> to vector<1x8x8xbf16>
    %101 = vector.extract_strided_slice %38 {offsets = [0, 0, 88], sizes = [1, 8, 8], strides = [1, 1, 1]} : vector<1x8x96xbf16> to vector<1x8x8xbf16>
    "tpu.trace_start"() <{level = 10 : i32, message = "bqd,bkd->bqk"}> : () -> ()
    %cst_37 = arith.constant dense<0.000000e+00> : vector<1x8x8xf32>
    %102 = tpu.matmul %99, %100, %cst_37 {dimension_numbers = #tpu.dot_dimension_numbers<[2], [2], [1], [1], [0, 0, 0, 1, 1, 1], [0], [0]>} : vector<1x8x8xbf16>, vector<1x8x8xbf16>, vector<1x8x8xf32> -> vector<1x8x8xf32>
    "tpu.trace_stop"() : () -> ()
    %cst_38 = arith.constant 0.353553385 : f32
    %103 = vector.broadcast %cst_38 : f32 to vector<1x8x8xf32>
    %104 = arith.mulf %102, %103 : vector<1x8x8xf32>
    %105 = vector.broadcast %5 : vector<1x1x8xf32> to vector<1x8x8xf32>
    %106 = arith.addf %104, %105 : vector<1x8x8xf32>
    %cst_39 = arith.constant dense<0xFF800000> : vector<1x8xf32>
    %107 = vector.multi_reduction <maximumf>, %106, %cst_39 [2] : vector<1x8x8xf32> to vector<1x8xf32>
    %108 = vector.shape_cast %107 : vector<1x8xf32> to vector<1x8x1xf32>
    %109 = vector.broadcast %108 : vector<1x8x1xf32> to vector<1x8x8xf32>
    %110 = arith.subf %106, %109 : vector<1x8x8xf32>
    %111 = math.exp %110 : vector<1x8x8xf32>
    %cst_40 = arith.constant dense<0.000000e+00> : vector<1x8xf32>
    %112 = vector.multi_reduction <add>, %111, %cst_40 [2] : vector<1x8x8xf32> to vector<1x8xf32>
    %113 = vector.shape_cast %112 : vector<1x8xf32> to vector<1x8x1xf32>
    %114 = tpu.reciprocal %113 {approx = true} : vector<1x8x1xf32> -> vector<1x8x1xf32>
    %115 = vector.broadcast %114 : vector<1x8x1xf32> to vector<1x8x8xf32>
    %116 = arith.mulf %111, %115 : vector<1x8x8xf32>
    %117 = arith.truncf %116 : vector<1x8x8xf32> to vector<1x8x8xbf16>
    "tpu.trace_start"() <{level = 10 : i32, message = "bqk,bkd->bqd"}> : () -> ()
    %cst_41 = arith.constant dense<0.000000e+00> : vector<1x8x8xf32>
    %118 = tpu.matmul %117, %101, %cst_41 {dimension_numbers = #tpu.dot_dimension_numbers<[2], [1], [1], [2], [0, 0, 0, 1, 1, 2], [0], [0]>} : vector<1x8x8xbf16>, vector<1x8x8xbf16>, vector<1x8x8xf32> -> vector<1x8x8xf32>
    "tpu.trace_stop"() : () -> ()
    %119 = tpu.concatenate %58, %78, %98, %118 in 2 : vector<1x8x8xf32>, vector<1x8x8xf32>, vector<1x8x8xf32>, vector<1x8x8xf32> -> vector<1x8x32xf32>
    %120 = vector.shape_cast %119 : vector<1x8x32xf32> to vector<8x32xf32>
    %121 = arith.truncf %120 : vector<8x32xf32> to vector<8x32xbf16>
    %c0_42 = arith.constant 0 : index
    %c0_43 = arith.constant 0 : index
    %c0_44 = arith.constant 0 : index
    %122 = vector.load %arg7[%c0_42, %c0_43, %c0_44] : memref<2x32x32xbf16, #tpu.memory_space<vmem>>, vector<1x32x32xbf16>
    %123 = vector.shape_cast %122 : vector<1x32x32xbf16> to vector<32x32xbf16>
    %cst_45 = arith.constant dense<0.000000e+00> : vector<8x32xf32>
    %124 = tpu.matmul %121, %123, %cst_45 {dimension_numbers = #tpu.dot_dimension_numbers<[1], [0], [0], [1], [0, 0, 1, 1], [], []>} : vector<8x32xbf16>, vector<32x32xbf16>, vector<8x32xf32> -> vector<8x32xf32>
    %c0_46 = arith.constant 0 : index
    %c0_47 = arith.constant 0 : index
    %c0_48 = arith.constant 0 : index
    %125 = vector.load %arg8[%c0_46, %c0_47, %c0_48] : memref<2x1x32xf32, #tpu.memory_space<vmem>>, vector<1x1x32xf32>
    %126 = vector.shape_cast %125 : vector<1x1x32xf32> to vector<1x32xf32>
    %127 = vector.broadcast %126 : vector<1x32xf32> to vector<8x32xf32>
    %128 = arith.addf %124, %127 : vector<8x32xf32>
    %129 = arith.addf %128, %28 : vector<8x32xf32>
    %c0_49 = arith.constant 0 : index
    %c0_50 = arith.constant 0 : index
    %c0_51 = arith.constant 0 : index
    %130 = vector.load %arg9[%c0_49, %c0_50, %c0_51] : memref<2x1x32xf32, #tpu.memory_space<vmem>>, vector<1x1x32xf32>
    %131 = vector.shape_cast %130 : vector<1x1x32xf32> to vector<1x32xf32>
    %c0_52 = arith.constant 0 : index
    %c0_53 = arith.constant 0 : index
    %c0_54 = arith.constant 0 : index
    %132 = vector.load %arg10[%c0_52, %c0_53, %c0_54] : memref<2x1x32xf32, #tpu.memory_space<vmem>>, vector<1x1x32xf32>
    %133 = vector.shape_cast %132 : vector<1x1x32xf32> to vector<1x32xf32>
    %cst_55 = arith.constant dense<0.000000e+00> : vector<8xf32>
    %134 = vector.multi_reduction <add>, %129, %cst_55 [1] : vector<8x32xf32> to vector<8xf32>
    %135 = vector.shape_cast %134 : vector<8xf32> to vector<8x1xf32>
    %cst_56 = arith.constant 3.200000e+01 : f32
    %136 = vector.broadcast %cst_56 : f32 to vector<8x1xf32>
    %137 = arith.divf %135, %136 : vector<8x1xf32>
    %138 = vector.broadcast %137 : vector<8x1xf32> to vector<8x32xf32>
    %139 = arith.subf %129, %138 : vector<8x32xf32>
    %140 = arith.mulf %139, %139 : vector<8x32xf32>
    %cst_57 = arith.constant dense<0.000000e+00> : vector<8xf32>
    %141 = vector.multi_reduction <add>, %140, %cst_57 [1] : vector<8x32xf32> to vector<8xf32>
    %142 = vector.shape_cast %141 : vector<8xf32> to vector<8x1xf32>
    %cst_58 = arith.constant 3.200000e+01 : f32
    %143 = vector.broadcast %cst_58 : f32 to vector<8x1xf32>
    %144 = arith.divf %142, %143 : vector<8x1xf32>
    %cst_59 = arith.constant 9.99999996E-13 : f32
    %145 = vector.broadcast %cst_59 : f32 to vector<8x1xf32>
    %146 = arith.addf %144, %145 : vector<8x1xf32>
    %147 = math.rsqrt %146 : vector<8x1xf32>
    %148 = vector.broadcast %147 : vector<8x1xf32> to vector<8x32xf32>
    %149 = arith.mulf %139, %148 : vector<8x32xf32>
    %150 = vector.broadcast %131 : vector<1x32xf32> to vector<8x32xf32>
    %151 = arith.mulf %149, %150 : vector<8x32xf32>
    %152 = vector.broadcast %133 : vector<1x32xf32> to vector<8x32xf32>
    %153 = arith.addf %151, %152 : vector<8x32xf32>
    %154 = arith.truncf %153 : vector<8x32xf32> to vector<8x32xbf16>
    %c0_60 = arith.constant 0 : index
    %c0_61 = arith.constant 0 : index
    %c0_62 = arith.constant 0 : index
    %155 = vector.load %arg11[%c0_60, %c0_61, %c0_62] : memref<2x32x128xbf16, #tpu.memory_space<vmem>>, vector<1x32x128xbf16>
    %156 = vector.shape_cast %155 : vector<1x32x128xbf16> to vector<32x128xbf16>
    %cst_63 = arith.constant dense<0.000000e+00> : vector<8x128xf32>
    %157 = tpu.matmul %154, %156, %cst_63 {dimension_numbers = #tpu.dot_dimension_numbers<[1], [0], [0], [1], [0, 0, 1, 1], [], []>} : vector<8x32xbf16>, vector<32x128xbf16>, vector<8x128xf32> -> vector<8x128xf32>
    %c0_64 = arith.constant 0 : index
    %c0_65 = arith.constant 0 : index
    %c0_66 = arith.constant 0 : index
    %158 = vector.load %arg12[%c0_64, %c0_65, %c0_66] : memref<2x1x128xf32, #tpu.memory_space<vmem>>, vector<1x1x128xf32>
    %159 = vector.shape_cast %158 : vector<1x1x128xf32> to vector<1x128xf32>
    %160 = vector.broadcast %159 : vector<1x128xf32> to vector<8x128xf32>
    %161 = arith.addf %157, %160 : vector<8x128xf32>
    %cst_67 = arith.constant 5.000000e-01 : f32
    %162 = vector.broadcast %cst_67 : f32 to vector<8x128xf32>
    %163 = arith.mulf %162, %161 : vector<8x128xf32>
    %cst_68 = arith.constant 4.471500e-02 : f32
    %164 = vector.broadcast %cst_68 : f32 to vector<8x128xf32>
    %165 = arith.mulf %164, %161 : vector<8x128xf32>
    %166 = arith.mulf %165, %161 : vector<8x128xf32>
    %167 = arith.mulf %166, %161 : vector<8x128xf32>
    %168 = arith.addf %161, %167 : vector<8x128xf32>
    %cst_69 = arith.constant 0.797884583 : f32
    %169 = vector.broadcast %cst_69 : f32 to vector<8x128xf32>
    %170 = arith.mulf %169, %168 : vector<8x128xf32>
    %171 = math.tanh %170 : vector<8x128xf32>
    %cst_70 = arith.constant 1.000000e+00 : f32
    %172 = vector.broadcast %cst_70 : f32 to vector<8x128xf32>
    %173 = arith.addf %172, %171 : vector<8x128xf32>
    %174 = arith.mulf %163, %173 : vector<8x128xf32>
    %175 = arith.truncf %174 : vector<8x128xf32> to vector<8x128xbf16>
    %c0_71 = arith.constant 0 : index
    %c0_72 = arith.constant 0 : index
    %c0_73 = arith.constant 0 : index
    %176 = vector.load %arg13[%c0_71, %c0_72, %c0_73] : memref<2x128x32xbf16, #tpu.memory_space<vmem>>, vector<1x128x32xbf16>
    %177 = vector.shape_cast %176 : vector<1x128x32xbf16> to vector<128x32xbf16>
    %cst_74 = arith.constant dense<0.000000e+00> : vector<8x32xf32>
    %178 = tpu.matmul %175, %177, %cst_74 {dimension_numbers = #tpu.dot_dimension_numbers<[1], [0], [0], [1], [0, 0, 1, 1], [], []>} : vector<8x128xbf16>, vector<128x32xbf16>, vector<8x32xf32> -> vector<8x32xf32>
    %c0_75 = arith.constant 0 : index
    %c0_76 = arith.constant 0 : index
    %c0_77 = arith.constant 0 : index
    %179 = vector.load %arg14[%c0_75, %c0_76, %c0_77] : memref<2x1x32xf32, #tpu.memory_space<vmem>>, vector<1x1x32xf32>
    %180 = vector.shape_cast %179 : vector<1x1x32xf32> to vector<1x32xf32>
    %181 = vector.broadcast %180 : vector<1x32xf32> to vector<8x32xf32>
    %182 = arith.addf %178, %181 : vector<8x32xf32>
    %183 = arith.addf %182, %153 : vector<8x32xf32>
    %c0_78 = arith.constant 0 : index
    %c0_79 = arith.constant 0 : index
    %c0_80 = arith.constant 0 : index
    %184 = vector.load %arg15[%c0_78, %c0_79, %c0_80] : memref<2x1x32xf32, #tpu.memory_space<vmem>>, vector<1x1x32xf32>
    %185 = vector.shape_cast %184 : vector<1x1x32xf32> to vector<1x32xf32>
    %c0_81 = arith.constant 0 : index
    %c0_82 = arith.constant 0 : index
    %c0_83 = arith.constant 0 : index
    %186 = vector.load %arg16[%c0_81, %c0_82, %c0_83] : memref<2x1x32xf32, #tpu.memory_space<vmem>>, vector<1x1x32xf32>
    %187 = vector.shape_cast %186 : vector<1x1x32xf32> to vector<1x32xf32>
    %cst_84 = arith.constant dense<0.000000e+00> : vector<8xf32>
    %188 = vector.multi_reduction <add>, %183, %cst_84 [1] : vector<8x32xf32> to vector<8xf32>
    %189 = vector.shape_cast %188 : vector<8xf32> to vector<8x1xf32>
    %cst_85 = arith.constant 3.200000e+01 : f32
    %190 = vector.broadcast %cst_85 : f32 to vector<8x1xf32>
    %191 = arith.divf %189, %190 : vector<8x1xf32>
    %192 = vector.broadcast %191 : vector<8x1xf32> to vector<8x32xf32>
    %193 = arith.subf %183, %192 : vector<8x32xf32>
    %194 = arith.mulf %193, %193 : vector<8x32xf32>
    %cst_86 = arith.constant dense<0.000000e+00> : vector<8xf32>
    %195 = vector.multi_reduction <add>, %194, %cst_86 [1] : vector<8x32xf32> to vector<8xf32>
    %196 = vector.shape_cast %195 : vector<8xf32> to vector<8x1xf32>
    %cst_87 = arith.constant 3.200000e+01 : f32
    %197 = vector.broadcast %cst_87 : f32 to vector<8x1xf32>
    %198 = arith.divf %196, %197 : vector<8x1xf32>
    %cst_88 = arith.constant 9.99999996E-13 : f32
    %199 = vector.broadcast %cst_88 : f32 to vector<8x1xf32>
    %200 = arith.addf %198, %199 : vector<8x1xf32>
    %201 = math.rsqrt %200 : vector<8x1xf32>
    %202 = vector.broadcast %201 : vector<8x1xf32> to vector<8x32xf32>
    %203 = arith.mulf %193, %202 : vector<8x32xf32>
    %204 = vector.broadcast %185 : vector<1x32xf32> to vector<8x32xf32>
    %205 = arith.mulf %203, %204 : vector<8x32xf32>
    %206 = vector.broadcast %187 : vector<1x32xf32> to vector<8x32xf32>
    %207 = arith.addf %205, %206 : vector<8x32xf32>
    %208 = arith.truncf %207 : vector<8x32xf32> to vector<8x32xbf16>
    %c1 = arith.constant 1 : index
    %c0_89 = arith.constant 0 : index
    %c0_90 = arith.constant 0 : index
    %209 = vector.load %arg5[%c1, %c0_89, %c0_90] : memref<2x32x96xbf16, #tpu.memory_space<vmem>>, vector<1x32x96xbf16>
    %210 = vector.shape_cast %209 : vector<1x32x96xbf16> to vector<32x96xbf16>
    %cst_91 = arith.constant dense<0.000000e+00> : vector<8x96xf32>
    %211 = tpu.matmul %208, %210, %cst_91 {dimension_numbers = #tpu.dot_dimension_numbers<[1], [0], [0], [1], [0, 0, 1, 1], [], []>} : vector<8x32xbf16>, vector<32x96xbf16>, vector<8x96xf32> -> vector<8x96xf32>
    %c1_92 = arith.constant 1 : index
    %c0_93 = arith.constant 0 : index
    %c0_94 = arith.constant 0 : index
    %212 = vector.load %arg6[%c1_92, %c0_93, %c0_94] : memref<2x1x96xf32, #tpu.memory_space<vmem>>, vector<1x1x96xf32>
    %213 = vector.shape_cast %212 : vector<1x1x96xf32> to vector<1x96xf32>
    %214 = vector.broadcast %213 : vector<1x96xf32> to vector<8x96xf32>
    %215 = arith.addf %211, %214 : vector<8x96xf32>
    %216 = arith.truncf %215 : vector<8x96xf32> to vector<8x96xbf16>
    %217 = vector.shape_cast %216 : vector<8x96xbf16> to vector<1x8x96xbf16>
    %218 = vector.extract_strided_slice %217 {offsets = [0, 0, 0], sizes = [1, 8, 8], strides = [1, 1, 1]} : vector<1x8x96xbf16> to vector<1x8x8xbf16>
    %219 = vector.extract_strided_slice %217 {offsets = [0, 0, 32], sizes = [1, 8, 8], strides = [1, 1, 1]} : vector<1x8x96xbf16> to vector<1x8x8xbf16>
    %220 = vector.extract_strided_slice %217 {offsets = [0, 0, 64], sizes = [1, 8, 8], strides = [1, 1, 1]} : vector<1x8x96xbf16> to vector<1x8x8xbf16>
    "tpu.trace_start"() <{level = 10 : i32, message = "bqd,bkd->bqk"}> : () -> ()
    %cst_95 = arith.constant dense<0.000000e+00> : vector<1x8x8xf32>
    %221 = tpu.matmul %218, %219, %cst_95 {dimension_numbers = #tpu.dot_dimension_numbers<[2], [2], [1], [1], [0, 0, 0, 1, 1, 1], [0], [0]>} : vector<1x8x8xbf16>, vector<1x8x8xbf16>, vector<1x8x8xf32> -> vector<1x8x8xf32>
    "tpu.trace_stop"() : () -> ()
    %cst_96 = arith.constant 0.353553385 : f32
    %222 = vector.broadcast %cst_96 : f32 to vector<1x8x8xf32>
    %223 = arith.mulf %221, %222 : vector<1x8x8xf32>
    %224 = vector.broadcast %5 : vector<1x1x8xf32> to vector<1x8x8xf32>
    %225 = arith.addf %223, %224 : vector<1x8x8xf32>
    %cst_97 = arith.constant dense<0xFF800000> : vector<1x8xf32>
    %226 = vector.multi_reduction <maximumf>, %225, %cst_97 [2] : vector<1x8x8xf32> to vector<1x8xf32>
    %227 = vector.shape_cast %226 : vector<1x8xf32> to vector<1x8x1xf32>
    %228 = vector.broadcast %227 : vector<1x8x1xf32> to vector<1x8x8xf32>
    %229 = arith.subf %225, %228 : vector<1x8x8xf32>
    %230 = math.exp %229 : vector<1x8x8xf32>
    %cst_98 = arith.constant dense<0.000000e+00> : vector<1x8xf32>
    %231 = vector.multi_reduction <add>, %230, %cst_98 [2] : vector<1x8x8xf32> to vector<1x8xf32>
    %232 = vector.shape_cast %231 : vector<1x8xf32> to vector<1x8x1xf32>
    %233 = tpu.reciprocal %232 {approx = true} : vector<1x8x1xf32> -> vector<1x8x1xf32>
    %234 = vector.broadcast %233 : vector<1x8x1xf32> to vector<1x8x8xf32>
    %235 = arith.mulf %230, %234 : vector<1x8x8xf32>
    %236 = arith.truncf %235 : vector<1x8x8xf32> to vector<1x8x8xbf16>
    "tpu.trace_start"() <{level = 10 : i32, message = "bqk,bkd->bqd"}> : () -> ()
    %cst_99 = arith.constant dense<0.000000e+00> : vector<1x8x8xf32>
    %237 = tpu.matmul %236, %220, %cst_99 {dimension_numbers = #tpu.dot_dimension_numbers<[2], [1], [1], [2], [0, 0, 0, 1, 1, 2], [0], [0]>} : vector<1x8x8xbf16>, vector<1x8x8xbf16>, vector<1x8x8xf32> -> vector<1x8x8xf32>
    "tpu.trace_stop"() : () -> ()
    %238 = vector.extract_strided_slice %217 {offsets = [0, 0, 8], sizes = [1, 8, 8], strides = [1, 1, 1]} : vector<1x8x96xbf16> to vector<1x8x8xbf16>
    %239 = vector.extract_strided_slice %217 {offsets = [0, 0, 40], sizes = [1, 8, 8], strides = [1, 1, 1]} : vector<1x8x96xbf16> to vector<1x8x8xbf16>
    %240 = vector.extract_strided_slice %217 {offsets = [0, 0, 72], sizes = [1, 8, 8], strides = [1, 1, 1]} : vector<1x8x96xbf16> to vector<1x8x8xbf16>
    "tpu.trace_start"() <{level = 10 : i32, message = "bqd,bkd->bqk"}> : () -> ()
    %cst_100 = arith.constant dense<0.000000e+00> : vector<1x8x8xf32>
    %241 = tpu.matmul %238, %239, %cst_100 {dimension_numbers = #tpu.dot_dimension_numbers<[2], [2], [1], [1], [0, 0, 0, 1, 1, 1], [0], [0]>} : vector<1x8x8xbf16>, vector<1x8x8xbf16>, vector<1x8x8xf32> -> vector<1x8x8xf32>
    "tpu.trace_stop"() : () -> ()
    %cst_101 = arith.constant 0.353553385 : f32
    %242 = vector.broadcast %cst_101 : f32 to vector<1x8x8xf32>
    %243 = arith.mulf %241, %242 : vector<1x8x8xf32>
    %244 = vector.broadcast %5 : vector<1x1x8xf32> to vector<1x8x8xf32>
    %245 = arith.addf %243, %244 : vector<1x8x8xf32>
    %cst_102 = arith.constant dense<0xFF800000> : vector<1x8xf32>
    %246 = vector.multi_reduction <maximumf>, %245, %cst_102 [2] : vector<1x8x8xf32> to vector<1x8xf32>
    %247 = vector.shape_cast %246 : vector<1x8xf32> to vector<1x8x1xf32>
    %248 = vector.broadcast %247 : vector<1x8x1xf32> to vector<1x8x8xf32>
    %249 = arith.subf %245, %248 : vector<1x8x8xf32>
    %250 = math.exp %249 : vector<1x8x8xf32>
    %cst_103 = arith.constant dense<0.000000e+00> : vector<1x8xf32>
    %251 = vector.multi_reduction <add>, %250, %cst_103 [2] : vector<1x8x8xf32> to vector<1x8xf32>
    %252 = vector.shape_cast %251 : vector<1x8xf32> to vector<1x8x1xf32>
    %253 = tpu.reciprocal %252 {approx = true} : vector<1x8x1xf32> -> vector<1x8x1xf32>
    %254 = vector.broadcast %253 : vector<1x8x1xf32> to vector<1x8x8xf32>
    %255 = arith.mulf %250, %254 : vector<1x8x8xf32>
    %256 = arith.truncf %255 : vector<1x8x8xf32> to vector<1x8x8xbf16>
    "tpu.trace_start"() <{level = 10 : i32, message = "bqk,bkd->bqd"}> : () -> ()
    %cst_104 = arith.constant dense<0.000000e+00> : vector<1x8x8xf32>
    %257 = tpu.matmul %256, %240, %cst_104 {dimension_numbers = #tpu.dot_dimension_numbers<[2], [1], [1], [2], [0, 0, 0, 1, 1, 2], [0], [0]>} : vector<1x8x8xbf16>, vector<1x8x8xbf16>, vector<1x8x8xf32> -> vector<1x8x8xf32>
    "tpu.trace_stop"() : () -> ()
    %258 = vector.extract_strided_slice %217 {offsets = [0, 0, 16], sizes = [1, 8, 8], strides = [1, 1, 1]} : vector<1x8x96xbf16> to vector<1x8x8xbf16>
    %259 = vector.extract_strided_slice %217 {offsets = [0, 0, 48], sizes = [1, 8, 8], strides = [1, 1, 1]} : vector<1x8x96xbf16> to vector<1x8x8xbf16>
    %260 = vector.extract_strided_slice %217 {offsets = [0, 0, 80], sizes = [1, 8, 8], strides = [1, 1, 1]} : vector<1x8x96xbf16> to vector<1x8x8xbf16>
    "tpu.trace_start"() <{level = 10 : i32, message = "bqd,bkd->bqk"}> : () -> ()
    %cst_105 = arith.constant dense<0.000000e+00> : vector<1x8x8xf32>
    %261 = tpu.matmul %258, %259, %cst_105 {dimension_numbers = #tpu.dot_dimension_numbers<[2], [2], [1], [1], [0, 0, 0, 1, 1, 1], [0], [0]>} : vector<1x8x8xbf16>, vector<1x8x8xbf16>, vector<1x8x8xf32> -> vector<1x8x8xf32>
    "tpu.trace_stop"() : () -> ()
    %cst_106 = arith.constant 0.353553385 : f32
    %262 = vector.broadcast %cst_106 : f32 to vector<1x8x8xf32>
    %263 = arith.mulf %261, %262 : vector<1x8x8xf32>
    %264 = vector.broadcast %5 : vector<1x1x8xf32> to vector<1x8x8xf32>
    %265 = arith.addf %263, %264 : vector<1x8x8xf32>
    %cst_107 = arith.constant dense<0xFF800000> : vector<1x8xf32>
    %266 = vector.multi_reduction <maximumf>, %265, %cst_107 [2] : vector<1x8x8xf32> to vector<1x8xf32>
    %267 = vector.shape_cast %266 : vector<1x8xf32> to vector<1x8x1xf32>
    %268 = vector.broadcast %267 : vector<1x8x1xf32> to vector<1x8x8xf32>
    %269 = arith.subf %265, %268 : vector<1x8x8xf32>
    %270 = math.exp %269 : vector<1x8x8xf32>
    %cst_108 = arith.constant dense<0.000000e+00> : vector<1x8xf32>
    %271 = vector.multi_reduction <add>, %270, %cst_108 [2] : vector<1x8x8xf32> to vector<1x8xf32>
    %272 = vector.shape_cast %271 : vector<1x8xf32> to vector<1x8x1xf32>
    %273 = tpu.reciprocal %272 {approx = true} : vector<1x8x1xf32> -> vector<1x8x1xf32>
    %274 = vector.broadcast %273 : vector<1x8x1xf32> to vector<1x8x8xf32>
    %275 = arith.mulf %270, %274 : vector<1x8x8xf32>
    %276 = arith.truncf %275 : vector<1x8x8xf32> to vector<1x8x8xbf16>
    "tpu.trace_start"() <{level = 10 : i32, message = "bqk,bkd->bqd"}> : () -> ()
    %cst_109 = arith.constant dense<0.000000e+00> : vector<1x8x8xf32>
    %277 = tpu.matmul %276, %260, %cst_109 {dimension_numbers = #tpu.dot_dimension_numbers<[2], [1], [1], [2], [0, 0, 0, 1, 1, 2], [0], [0]>} : vector<1x8x8xbf16>, vector<1x8x8xbf16>, vector<1x8x8xf32> -> vector<1x8x8xf32>
    "tpu.trace_stop"() : () -> ()
    %278 = vector.extract_strided_slice %217 {offsets = [0, 0, 24], sizes = [1, 8, 8], strides = [1, 1, 1]} : vector<1x8x96xbf16> to vector<1x8x8xbf16>
    %279 = vector.extract_strided_slice %217 {offsets = [0, 0, 56], sizes = [1, 8, 8], strides = [1, 1, 1]} : vector<1x8x96xbf16> to vector<1x8x8xbf16>
    %280 = vector.extract_strided_slice %217 {offsets = [0, 0, 88], sizes = [1, 8, 8], strides = [1, 1, 1]} : vector<1x8x96xbf16> to vector<1x8x8xbf16>
    "tpu.trace_start"() <{level = 10 : i32, message = "bqd,bkd->bqk"}> : () -> ()
    %cst_110 = arith.constant dense<0.000000e+00> : vector<1x8x8xf32>
    %281 = tpu.matmul %278, %279, %cst_110 {dimension_numbers = #tpu.dot_dimension_numbers<[2], [2], [1], [1], [0, 0, 0, 1, 1, 1], [0], [0]>} : vector<1x8x8xbf16>, vector<1x8x8xbf16>, vector<1x8x8xf32> -> vector<1x8x8xf32>
    "tpu.trace_stop"() : () -> ()
    %cst_111 = arith.constant 0.353553385 : f32
    %282 = vector.broadcast %cst_111 : f32 to vector<1x8x8xf32>
    %283 = arith.mulf %281, %282 : vector<1x8x8xf32>
    %284 = vector.broadcast %5 : vector<1x1x8xf32> to vector<1x8x8xf32>
    %285 = arith.addf %283, %284 : vector<1x8x8xf32>
    %cst_112 = arith.constant dense<0xFF800000> : vector<1x8xf32>
    %286 = vector.multi_reduction <maximumf>, %285, %cst_112 [2] : vector<1x8x8xf32> to vector<1x8xf32>
    %287 = vector.shape_cast %286 : vector<1x8xf32> to vector<1x8x1xf32>
    %288 = vector.broadcast %287 : vector<1x8x1xf32> to vector<1x8x8xf32>
    %289 = arith.subf %285, %288 : vector<1x8x8xf32>
    %290 = math.exp %289 : vector<1x8x8xf32>
    %cst_113 = arith.constant dense<0.000000e+00> : vector<1x8xf32>
    %291 = vector.multi_reduction <add>, %290, %cst_113 [2] : vector<1x8x8xf32> to vector<1x8xf32>
    %292 = vector.shape_cast %291 : vector<1x8xf32> to vector<1x8x1xf32>
    %293 = tpu.reciprocal %292 {approx = true} : vector<1x8x1xf32> -> vector<1x8x1xf32>
    %294 = vector.broadcast %293 : vector<1x8x1xf32> to vector<1x8x8xf32>
    %295 = arith.mulf %290, %294 : vector<1x8x8xf32>
    %296 = arith.truncf %295 : vector<1x8x8xf32> to vector<1x8x8xbf16>
    "tpu.trace_start"() <{level = 10 : i32, message = "bqk,bkd->bqd"}> : () -> ()
    %cst_114 = arith.constant dense<0.000000e+00> : vector<1x8x8xf32>
    %297 = tpu.matmul %296, %280, %cst_114 {dimension_numbers = #tpu.dot_dimension_numbers<[2], [1], [1], [2], [0, 0, 0, 1, 1, 2], [0], [0]>} : vector<1x8x8xbf16>, vector<1x8x8xbf16>, vector<1x8x8xf32> -> vector<1x8x8xf32>
    "tpu.trace_stop"() : () -> ()
    %298 = tpu.concatenate %237, %257, %277, %297 in 2 : vector<1x8x8xf32>, vector<1x8x8xf32>, vector<1x8x8xf32>, vector<1x8x8xf32> -> vector<1x8x32xf32>
    %299 = vector.shape_cast %298 : vector<1x8x32xf32> to vector<8x32xf32>
    %300 = arith.truncf %299 : vector<8x32xf32> to vector<8x32xbf16>
    %c1_115 = arith.constant 1 : index
    %c0_116 = arith.constant 0 : index
    %c0_117 = arith.constant 0 : index
    %301 = vector.load %arg7[%c1_115, %c0_116, %c0_117] : memref<2x32x32xbf16, #tpu.memory_space<vmem>>, vector<1x32x32xbf16>
    %302 = vector.shape_cast %301 : vector<1x32x32xbf16> to vector<32x32xbf16>
    %cst_118 = arith.constant dense<0.000000e+00> : vector<8x32xf32>
    %303 = tpu.matmul %300, %302, %cst_118 {dimension_numbers = #tpu.dot_dimension_numbers<[1], [0], [0], [1], [0, 0, 1, 1], [], []>} : vector<8x32xbf16>, vector<32x32xbf16>, vector<8x32xf32> -> vector<8x32xf32>
    %c1_119 = arith.constant 1 : index
    %c0_120 = arith.constant 0 : index
    %c0_121 = arith.constant 0 : index
    %304 = vector.load %arg8[%c1_119, %c0_120, %c0_121] : memref<2x1x32xf32, #tpu.memory_space<vmem>>, vector<1x1x32xf32>
    %305 = vector.shape_cast %304 : vector<1x1x32xf32> to vector<1x32xf32>
    %306 = vector.broadcast %305 : vector<1x32xf32> to vector<8x32xf32>
    %307 = arith.addf %303, %306 : vector<8x32xf32>
    %308 = arith.addf %307, %207 : vector<8x32xf32>
    %c1_122 = arith.constant 1 : index
    %c0_123 = arith.constant 0 : index
    %c0_124 = arith.constant 0 : index
    %309 = vector.load %arg9[%c1_122, %c0_123, %c0_124] : memref<2x1x32xf32, #tpu.memory_space<vmem>>, vector<1x1x32xf32>
    %310 = vector.shape_cast %309 : vector<1x1x32xf32> to vector<1x32xf32>
    %c1_125 = arith.constant 1 : index
    %c0_126 = arith.constant 0 : index
    %c0_127 = arith.constant 0 : index
    %311 = vector.load %arg10[%c1_125, %c0_126, %c0_127] : memref<2x1x32xf32, #tpu.memory_space<vmem>>, vector<1x1x32xf32>
    %312 = vector.shape_cast %311 : vector<1x1x32xf32> to vector<1x32xf32>
    %cst_128 = arith.constant dense<0.000000e+00> : vector<8xf32>
    %313 = vector.multi_reduction <add>, %308, %cst_128 [1] : vector<8x32xf32> to vector<8xf32>
    %314 = vector.shape_cast %313 : vector<8xf32> to vector<8x1xf32>
    %cst_129 = arith.constant 3.200000e+01 : f32
    %315 = vector.broadcast %cst_129 : f32 to vector<8x1xf32>
    %316 = arith.divf %314, %315 : vector<8x1xf32>
    %317 = vector.broadcast %316 : vector<8x1xf32> to vector<8x32xf32>
    %318 = arith.subf %308, %317 : vector<8x32xf32>
    %319 = arith.mulf %318, %318 : vector<8x32xf32>
    %cst_130 = arith.constant dense<0.000000e+00> : vector<8xf32>
    %320 = vector.multi_reduction <add>, %319, %cst_130 [1] : vector<8x32xf32> to vector<8xf32>
    %321 = vector.shape_cast %320 : vector<8xf32> to vector<8x1xf32>
    %cst_131 = arith.constant 3.200000e+01 : f32
    %322 = vector.broadcast %cst_131 : f32 to vector<8x1xf32>
    %323 = arith.divf %321, %322 : vector<8x1xf32>
    %cst_132 = arith.constant 9.99999996E-13 : f32
    %324 = vector.broadcast %cst_132 : f32 to vector<8x1xf32>
    %325 = arith.addf %323, %324 : vector<8x1xf32>
    %326 = math.rsqrt %325 : vector<8x1xf32>
    %327 = vector.broadcast %326 : vector<8x1xf32> to vector<8x32xf32>
    %328 = arith.mulf %318, %327 : vector<8x32xf32>
    %329 = vector.broadcast %310 : vector<1x32xf32> to vector<8x32xf32>
    %330 = arith.mulf %328, %329 : vector<8x32xf32>
    %331 = vector.broadcast %312 : vector<1x32xf32> to vector<8x32xf32>
    %332 = arith.addf %330, %331 : vector<8x32xf32>
    %333 = arith.truncf %332 : vector<8x32xf32> to vector<8x32xbf16>
    %c1_133 = arith.constant 1 : index
    %c0_134 = arith.constant 0 : index
    %c0_135 = arith.constant 0 : index
    %334 = vector.load %arg11[%c1_133, %c0_134, %c0_135] : memref<2x32x128xbf16, #tpu.memory_space<vmem>>, vector<1x32x128xbf16>
    %335 = vector.shape_cast %334 : vector<1x32x128xbf16> to vector<32x128xbf16>
    %cst_136 = arith.constant dense<0.000000e+00> : vector<8x128xf32>
    %336 = tpu.matmul %333, %335, %cst_136 {dimension_numbers = #tpu.dot_dimension_numbers<[1], [0], [0], [1], [0, 0, 1, 1], [], []>} : vector<8x32xbf16>, vector<32x128xbf16>, vector<8x128xf32> -> vector<8x128xf32>
    %c1_137 = arith.constant 1 : index
    %c0_138 = arith.constant 0 : index
    %c0_139 = arith.constant 0 : index
    %337 = vector.load %arg12[%c1_137, %c0_138, %c0_139] : memref<2x1x128xf32, #tpu.memory_space<vmem>>, vector<1x1x128xf32>
    %338 = vector.shape_cast %337 : vector<1x1x128xf32> to vector<1x128xf32>
    %339 = vector.broadcast %338 : vector<1x128xf32> to vector<8x128xf32>
    %340 = arith.addf %336, %339 : vector<8x128xf32>
    %cst_140 = arith.constant 5.000000e-01 : f32
    %341 = vector.broadcast %cst_140 : f32 to vector<8x128xf32>
    %342 = arith.mulf %341, %340 : vector<8x128xf32>
    %cst_141 = arith.constant 4.471500e-02 : f32
    %343 = vector.broadcast %cst_141 : f32 to vector<8x128xf32>
    %344 = arith.mulf %343, %340 : vector<8x128xf32>
    %345 = arith.mulf %344, %340 : vector<8x128xf32>
    %346 = arith.mulf %345, %340 : vector<8x128xf32>
    %347 = arith.addf %340, %346 : vector<8x128xf32>
    %cst_142 = arith.constant 0.797884583 : f32
    %348 = vector.broadcast %cst_142 : f32 to vector<8x128xf32>
    %349 = arith.mulf %348, %347 : vector<8x128xf32>
    %350 = math.tanh %349 : vector<8x128xf32>
    %cst_143 = arith.constant 1.000000e+00 : f32
    %351 = vector.broadcast %cst_143 : f32 to vector<8x128xf32>
    %352 = arith.addf %351, %350 : vector<8x128xf32>
    %353 = arith.mulf %342, %352 : vector<8x128xf32>
    %354 = arith.truncf %353 : vector<8x128xf32> to vector<8x128xbf16>
    %c1_144 = arith.constant 1 : index
    %c0_145 = arith.constant 0 : index
    %c0_146 = arith.constant 0 : index
    %355 = vector.load %arg13[%c1_144, %c0_145, %c0_146] : memref<2x128x32xbf16, #tpu.memory_space<vmem>>, vector<1x128x32xbf16>
    %356 = vector.shape_cast %355 : vector<1x128x32xbf16> to vector<128x32xbf16>
    %cst_147 = arith.constant dense<0.000000e+00> : vector<8x32xf32>
    %357 = tpu.matmul %354, %356, %cst_147 {dimension_numbers = #tpu.dot_dimension_numbers<[1], [0], [0], [1], [0, 0, 1, 1], [], []>} : vector<8x128xbf16>, vector<128x32xbf16>, vector<8x32xf32> -> vector<8x32xf32>
    %c1_148 = arith.constant 1 : index
    %c0_149 = arith.constant 0 : index
    %c0_150 = arith.constant 0 : index
    %358 = vector.load %arg14[%c1_148, %c0_149, %c0_150] : memref<2x1x32xf32, #tpu.memory_space<vmem>>, vector<1x1x32xf32>
    %359 = vector.shape_cast %358 : vector<1x1x32xf32> to vector<1x32xf32>
    %360 = vector.broadcast %359 : vector<1x32xf32> to vector<8x32xf32>
    %361 = arith.addf %357, %360 : vector<8x32xf32>
    %362 = arith.addf %361, %332 : vector<8x32xf32>
    %c1_151 = arith.constant 1 : index
    %c0_152 = arith.constant 0 : index
    %c0_153 = arith.constant 0 : index
    %363 = vector.load %arg15[%c1_151, %c0_152, %c0_153] : memref<2x1x32xf32, #tpu.memory_space<vmem>>, vector<1x1x32xf32>
    %364 = vector.shape_cast %363 : vector<1x1x32xf32> to vector<1x32xf32>
    %c1_154 = arith.constant 1 : index
    %c0_155 = arith.constant 0 : index
    %c0_156 = arith.constant 0 : index
    %365 = vector.load %arg16[%c1_154, %c0_155, %c0_156] : memref<2x1x32xf32, #tpu.memory_space<vmem>>, vector<1x1x32xf32>
    %366 = vector.shape_cast %365 : vector<1x1x32xf32> to vector<1x32xf32>
    %cst_157 = arith.constant dense<0.000000e+00> : vector<8xf32>
    %367 = vector.multi_reduction <add>, %362, %cst_157 [1] : vector<8x32xf32> to vector<8xf32>
    %368 = vector.shape_cast %367 : vector<8xf32> to vector<8x1xf32>
    %cst_158 = arith.constant 3.200000e+01 : f32
    %369 = vector.broadcast %cst_158 : f32 to vector<8x1xf32>
    %370 = arith.divf %368, %369 : vector<8x1xf32>
    %371 = vector.broadcast %370 : vector<8x1xf32> to vector<8x32xf32>
    %372 = arith.subf %362, %371 : vector<8x32xf32>
    %373 = arith.mulf %372, %372 : vector<8x32xf32>
    %cst_159 = arith.constant dense<0.000000e+00> : vector<8xf32>
    %374 = vector.multi_reduction <add>, %373, %cst_159 [1] : vector<8x32xf32> to vector<8xf32>
    %375 = vector.shape_cast %374 : vector<8xf32> to vector<8x1xf32>
    %cst_160 = arith.constant 3.200000e+01 : f32
    %376 = vector.broadcast %cst_160 : f32 to vector<8x1xf32>
    %377 = arith.divf %375, %376 : vector<8x1xf32>
    %cst_161 = arith.constant 9.99999996E-13 : f32
    %378 = vector.broadcast %cst_161 : f32 to vector<8x1xf32>
    %379 = arith.addf %377, %378 : vector<8x1xf32>
    %380 = math.rsqrt %379 : vector<8x1xf32>
    %381 = vector.broadcast %380 : vector<8x1xf32> to vector<8x32xf32>
    %382 = arith.mulf %372, %381 : vector<8x32xf32>
    %383 = vector.broadcast %364 : vector<1x32xf32> to vector<8x32xf32>
    %384 = arith.mulf %382, %383 : vector<8x32xf32>
    %385 = vector.broadcast %366 : vector<1x32xf32> to vector<8x32xf32>
    %386 = arith.addf %384, %385 : vector<8x32xf32>
    %387 = vector.shape_cast %386 : vector<8x32xf32> to vector<1x8x32xf32>
    %388 = vector.extract_strided_slice %387 {offsets = [0, 0, 0], sizes = [1, 1, 32], strides = [1, 1, 1]} : vector<1x8x32xf32> to vector<1x1x32xf32>
    %389 = vector.shape_cast %388 : vector<1x1x32xf32> to vector<1x32xf32>
    %390 = arith.truncf %389 : vector<1x32xf32> to vector<1x32xbf16>
    %c0_162 = arith.constant 0 : index
    %c0_163 = arith.constant 0 : index
    %391 = vector.load %arg17[%c0_162, %c0_163] : memref<32x32xbf16, #tpu.memory_space<vmem>>, vector<32x32xbf16>
    %cst_164 = arith.constant dense<0.000000e+00> : vector<1x32xf32>
    %392 = tpu.matmul %390, %391, %cst_164 {dimension_numbers = #tpu.dot_dimension_numbers<[1], [0], [0], [1], [0, 0, 1, 1], [], []>} : vector<1x32xbf16>, vector<32x32xbf16>, vector<1x32xf32> -> vector<1x32xf32>
    %c0_165 = arith.constant 0 : index
    %c0_166 = arith.constant 0 : index
    %393 = vector.load %arg18[%c0_165, %c0_166] : memref<1x32xf32, #tpu.memory_space<vmem>>, vector<1x32xf32>
    %394 = arith.addf %392, %393 : vector<1x32xf32>
    %395 = math.tanh %394 : vector<1x32xf32>
    %396 = arith.truncf %395 : vector<1x32xf32> to vector<1x32xbf16>
    %c0_167 = arith.constant 0 : index
    %c0_168 = arith.constant 0 : index
    %397 = vector.load %arg19[%c0_167, %c0_168] : memref<32x128xbf16, #tpu.memory_space<vmem>>, vector<32x128xbf16>
    %cst_169 = arith.constant dense<0.000000e+00> : vector<1x128xf32>
    %398 = tpu.matmul %396, %397, %cst_169 {dimension_numbers = #tpu.dot_dimension_numbers<[1], [0], [0], [1], [0, 0, 1, 1], [], []>} : vector<1x32xbf16>, vector<32x128xbf16>, vector<1x128xf32> -> vector<1x128xf32>
    %c0_170 = arith.constant 0 : index
    %c0_171 = arith.constant 0 : index
    %399 = vector.load %arg20[%c0_170, %c0_171] : memref<1x128xf32, #tpu.memory_space<vmem>>, vector<1x128xf32>
    %400 = arith.addf %398, %399 : vector<1x128xf32>
    %c0_172 = arith.constant 0 : index
    %c0_173 = arith.constant 0 : index
    %c0_174 = arith.constant 0 : index
    %401 = vector.load %arg21[%c0_172, %c0_173, %c0_174] : memref<1x1x128xf32, #tpu.memory_space<vmem>>, vector<1x1x128xf32>
    %402 = vector.shape_cast %401 : vector<1x1x128xf32> to vector<1x128xf32>
    %403 = vector.shape_cast %400 : vector<1x128xf32> to vector<1x1x128xf32>
    tpu.vector_store %arg21[%c0_172, %c0_173, %c0_174], %403 {strides = array<i32>} : memref<1x1x128xf32, #tpu.memory_space<vmem>>, vector<1x1x128xf32>,
    return
  }
  func.func @transform_0(%arg0: i32) -> (i32, i32, i32) {
    %c0_i32 = arith.constant 0 : i32
    %c0_i32_0 = arith.constant 0 : i32
    %c0_i32_1 = arith.constant 0 : i32
    return %arg0, %c0_i32, %c0_i32_0 : i32, i32, i32
  }
  func.func @transform_1(%arg0: i32) -> (i32, i32, i32) {
    %c0_i32 = arith.constant 0 : i32
    %c0_i32_0 = arith.constant 0 : i32
    %c0_i32_1 = arith.constant 0 : i32
    return %arg0, %c0_i32, %c0_i32_0 : i32, i32, i32
  }
  func.func @transform_2(%arg0: i32) -> (i32, i32) {
    %c0_i32 = arith.constant 0 : i32
    %c0_i32_0 = arith.constant 0 : i32
    %c0_i32_1 = arith.constant 0 : i32
    return %c0_i32, %c0_i32_0 : i32, i32
  }
  func.func @transform_3(%arg0: i32) -> (i32, i32) {
    %c0_i32 = arith.constant 0 : i32
    %c0_i32_0 = arith.constant 0 : i32
    %c0_i32_1 = arith.constant 0 : i32
    return %c0_i32, %c0_i32_0 : i32, i32
  }
  func.func @transform_4(%arg0: i32) -> (i32, i32, i32) {
    %c0_i32 = arith.constant 0 : i32
    %c0_i32_0 = arith.constant 0 : i32
    %c0_i32_1 = arith.constant 0 : i32
    %c0_i32_2 = arith.constant 0 : i32
    return %c0_i32, %c0_i32_0, %c0_i32_1 : i32, i32, i32
  }
  func.func @transform_5(%arg0: i32) -> (i32, i32, i32) {
    %c0_i32 = arith.constant 0 : i32
    %c0_i32_0 = arith.constant 0 : i32
    %c0_i32_1 = arith.constant 0 : i32
    %c0_i32_2 = arith.constant 0 : i32
    return %c0_i32, %c0_i32_0, %c0_i32_1 : i32, i32, i32
  }
  func.func @transform_6(%arg0: i32) -> (i32, i32, i32) {
    %c0_i32 = arith.constant 0 : i32
    %c0_i32_0 = arith.constant 0 : i32
    %c0_i32_1 = arith.constant 0 : i32
    %c0_i32_2 = arith.constant 0 : i32
    return %c0_i32, %c0_i32_0, %c0_i32_1 : i32, i32, i32
  }
  func.func @transform_7(%arg0: i32) -> (i32, i32, i32) {
    %c0_i32 = arith.constant 0 : i32
    %c0_i32_0 = arith.constant 0 : i32
    %c0_i32_1 = arith.constant 0 : i32
    %c0_i32_2 = arith.constant 0 : i32
    return %c0_i32, %c0_i32_0, %c0_i32_1 : i32, i32, i32
  }
  func.func @transform_8(%arg0: i32) -> (i32, i32, i32) {
    %c0_i32 = arith.constant 0 : i32
    %c0_i32_0 = arith.constant 0 : i32
    %c0_i32_1 = arith.constant 0 : i32
    %c0_i32_2 = arith.constant 0 : i32
    return %c0_i32, %c0_i32_0, %c0_i32_1 : i32, i32, i32
  }
  func.func @transform_9(%arg0: i32) -> (i32, i32, i32) {
    %c0_i32 = arith.constant 0 : i32
    %c0_i32_0 = arith.constant 0 : i32
    %c0_i32_1 = arith.constant 0 : i32
    %c0_i32_2 = arith.constant 0 : i32
    return %c0_i32, %c0_i32_0, %c0_i32_1 : i32, i32, i32
  }
  func.func @transform_10(%arg0: i32) -> (i32, i32, i32) {
    %c0_i32 = arith.constant 0 : i32
    %c0_i32_0 = arith.constant 0 : i32
    %c0_i32_1 = arith.constant 0 : i32
    %c0_i32_2 = arith.constant 0 : i32
    return %c0_i32, %c0_i32_0, %c0_i32_1 : i32, i32, i32
  }
  func.func @transform_11(%arg0: i32) -> (i32, i32, i32) {
    %c0_i32 = arith.constant 0 : i32
    %c0_i32_0 = arith.constant 0 : i32
    %c0_i32_1 = arith.constant 0 : i32
    %c0_i32_2 = arith.constant 0 : i32
    return %c0_i32, %c0_i32_0, %c0_i32_1 : i32, i32, i32
  }
  func.func @transform_12(%arg0: i32) -> (i32, i32, i32) {
    %c0_i32 = arith.constant 0 : i32
    %c0_i32_0 = arith.constant 0 : i32
    %c0_i32_1 = arith.constant 0 : i32
    %c0_i32_2 = arith.constant 0 : i32
    return %c0_i32, %c0_i32_0, %c0_i32_1 : i32, i32, i32
  }
  func.func @transform_13(%arg0: i32) -> (i32, i32, i32) {
    %c0_i32 = arith.constant 0 : i32
    %c0_i32_0 = arith.constant 0 : i32
    %c0_i32_1 = arith.constant 0 : i32
    %c0_i32_2 = arith.constant 0 : i32
    return %c0_i32, %c0_i32_0, %c0_i32_1 : i32, i32, i32
  }
  func.func @transform_14(%arg0: i32) -> (i32, i32, i32) {
    %c0_i32 = arith.constant 0 : i32
    %c0_i32_0 = arith.constant 0 : i32
    %c0_i32_1 = arith.constant 0 : i32
    %c0_i32_2 = arith.constant 0 : i32
    return %c0_i32, %c0_i32_0, %c0_i32_1 : i32, i32, i32
  }
  func.func @transform_15(%arg0: i32) -> (i32, i32, i32) {
    %c0_i32 = arith.constant 0 : i32
    %c0_i32_0 = arith.constant 0 : i32
    %c0_i32_1 = arith.constant 0 : i32
    %c0_i32_2 = arith.constant 0 : i32
    return %c0_i32, %c0_i32_0, %c0_i32_1 : i32, i32, i32
  }
  func.func @transform_16(%arg0: i32) -> (i32, i32) {
    %c0_i32 = arith.constant 0 : i32
    %c0_i32_0 = arith.constant 0 : i32
    %c0_i32_1 = arith.constant 0 : i32
    return %c0_i32, %c0_i32_0 : i32, i32
  }
  func.func @transform_17(%arg0: i32) -> (i32, i32) {
    %c0_i32 = arith.constant 0 : i32
    %c0_i32_0 = arith.constant 0 : i32
    %c0_i32_1 = arith.constant 0 : i32
    return %c0_i32, %c0_i32_0 : i32, i32
  }
  func.func @transform_18(%arg0: i32) -> (i32, i32) {
    %c0_i32 = arith.constant 0 : i32
    %c0_i32_0 = arith.constant 0 : i32
    %c0_i32_1 = arith.constant 0 : i32
    return %c0_i32, %c0_i32_0 : i32, i32
  }
  func.func @transform_19(%arg0: i32) -> (i32, i32) {
    %c0_i32 = arith.constant 0 : i32
    %c0_i32_0 = arith.constant 0 : i32
    %c0_i32_1 = arith.constant 0 : i32
    return %c0_i32, %c0_i32_0 : i32, i32
  }
  func.func @transform_20(%arg0: i32) -> (i32, i32, i32) {
    %c0_i32 = arith.constant 0 : i32
    %c0_i32_0 = arith.constant 0 : i32
    %c0_i32_1 = arith.constant 0 : i32
    return %arg0, %c0_i32, %c0_i32_0 : i32, i32, i32
  }
}

</mosaic_0001>

<bundles_post_ra>
// kernel: bert_nli_forward.1
= control target key start
LH: loop header
LB: loop body
LE: loop exit
PB: predicated region body
PF: predicated region fallthrough
CT: control target
= control target key end

     0   :  { %s2828_s0 = inlined_call_operand.vmem [shape: f32[2,8,32], index: 0, kind: input, shape index: {}]   ;;  %s2829_s1 = inlined_call_operand.vmem [shape: f32[2,1,8], index: 1, kind: input, shape index: {}]   ;;  %s2830_s2 = inlined_call_operand.vmem [shape: f32[1,32], index: 2, kind: input, shape index: {}]   ;;  %s2831_s3 = inlined_call_operand.vmem [shape: f32[1,32], index: 3, kind: input, shape index: {}]   ;;  %s2832_s4 = inlined_call_operand.vmem [shape: bf16[2,32,96], index: 4, kind: input, shape index: {}]   ;;  %s2833_s5 = inlined_call_operand.vmem [shape: f32[2,1,96], index: 5, kind: input, shape index: {}]   ;;  %s2834_s6 = inlined_call_operand.vmem [shape: bf16[2,32,32], index: 6, kind: input, shape index: {}]   ;;  %s2835_s7 = inlined_call_operand.vmem [shape: f32[2,1,32], index: 7, kind: input, shape index: {}]   ;;  %s2836_s8 = inlined_call_operand.vmem [shape: f32[2,1,32], index: 8, kind: input, shape index: {}]   ;;  %s2837_s9 = inlined_call_operand.vmem [shape: f32[2,1,32], index: 9, kind: input, shape index: {}]   ;;  %s2838_s10 = inlined_call_operand.vmem [shape: bf16[2,32,128], index: 10, kind: input, shape index: {}]   ;;  %s2839_s11 = inlined_call_operand.vmem [shape: f32[2,1,128], index: 11, kind: input, shape index: {}]   ;;  %s2840_s12 = inlined_call_operand.vmem [shape: bf16[2,128,32], index: 12, kind: input, shape index: {}]   ;;  %s2841_s13 = inlined_call_operand.vmem [shape: f32[2,1,32], index: 13, kind: input, shape index: {}]   ;;  %s2842_s14 = inlined_call_operand.vmem [shape: f32[2,1,32], index: 14, kind: input, shape index: {}]   ;;  %s2843_s15 = inlined_call_operand.vmem [shape: f32[2,1,32], index: 15, kind: input, shape index: {}]   ;;  %s2844_s16 = inlined_call_operand.vmem [shape: bf16[32,32], index: 16, kind: input, shape index: {}]   ;;  %s2845_s17 = inlined_call_operand.vmem [shape: f32[1,32], index: 17, kind: input, shape index: {}]   ;;  %s2846_s18 = inlined_call_operand.vmem [shape: bf16[32,128], index: 18, kind: input, shape index: {}]   ;;  %s2847_s19 = inlined_call_operand.vmem [shape: f32[1,128], index: 19, kind: input, shape index: {}]   ;;  %s2848_s20 = inlined_call_operand.hbm [shape: f32[2,1,128], index: 20, kind: output, shape index: {}]  }
   0x1   :  { %2869 = sst [smem:[#allocation10_spill]] %s2828_s0 }
   0x2   :  { %2870 = sst [smem:[#allocation11_spill]] %s2829_s1 }
   0x3   :  { %2871 = sst [smem:[#allocation12_spill]] %s2830_s2 }
   0x4   :  { %2872 = sst [smem:[#allocation13_spill]] %s2831_s3 }
   0x5   :  { %2873 = sst [smem:[#allocation14_spill]] %s2832_s4 }
   0x6   :  { %2874 = sst [smem:[#allocation15_spill]] %s2833_s5 }
   0x7   :  { %2875 = sst [smem:[#allocation16_spill]] %s2834_s6 }
   0x8   :  { %25 = vsyncpa [#allocation3], 0 }
   0x9   :  { %27 = vsyncpa [#allocation3 + $0x1], 0  ;;  %s2416_s1 = smov 0   ;;  %s2418_s22 = smov 0  }
   0xa   :  { %s2420_s23 = smov 0   ;;  %s2422_s24 = smov 0  }
   0xb LB: > { %2876 = sst [smem:[#allocation5_spill]] %s2282_s1  ;;  %s2437_s2 = sadd.s32 4294967295, %s2294_s24   ;;  %s2294_s24 = sphi %s2422_s24, %s2906_s24   ;;  %s2290_s23 = sphi %s2420_s23, %s2908_s23   ;;  %s2286_s22 = sphi %s2418_s22, %s2910_s22   ;;  %s2282_s1 = sphi %s2416_s1, %s2909_s1  }
   0xc   : > { %2877 = sst [smem:[#allocation6_spill]] %s2290_s23  ;;  %s1883_s25 = sadd.s32 4294967294, %s2294_s24  }
   0xd   : > { %s2441_s3 = sadd.s32 1, %s2294_s24   ;;  %s470_s26 = sadd.s32 1, %s2290_s23 }
   0xe   : > { %2878 = sst [smem:[#allocation7_spill]] %s2441_s3  ;;  %s467_s27 = ssub.s32 %s2294_s24, %s2441_s3 }
   0xf   : > { %p480_p0 = scmp.ne.s32.totalorder %s2290_s23, %s2286_s22  ;;  %p468_p1 = scmp.eq.s32.totalorder %s467_s27, 0 }
  0x10   : > { %p481_p2 = scmp.eq.s32.totalorder %s2437_s2, 1  ;;  %p486_p3 = scmp.ne.s32.totalorder %s2286_s22, %s2282_s1 }
  0x11   : > { %p487_p4 = scmp.eq.s32.totalorder %s1883_s25, 1  ;;  %p1886_p7 = scmp.ge.s32.totalorder %s2294_s24, 1 }
  0x12   : > { %s2452_s28 = scalar_select %p468_p1, %s2290_s23, %s470_s26  }
  0x13   : > { %p2454_p5 = por %p481_p2, %p480_p0  ;;  %p2458_p6 = por %p487_p4, %p486_p3 }
  0x14   : > { %2879 = sst [smem:[#allocation8_spill]] %s2452_s28  ;;  %p572_p8 = scmp.lt.s32.totalorder %s2294_s24, 3 }
  0x15   : > { %s2881_s29 = scalar_select %p2458_p6, 1, 0 }
  0x16   : > { %p573_p9 = pnand %p1886_p7, %p572_p8 }
  0x17   : > { %2882 = sst [smem:[#allocation9_spill]] %s2881_s29  ;;  %p631_p10 = scmp.lt.s32.totalorder (!%p573_p9), %s2437_s2, 1 }
  0x18   : > { %576 = sbr.rel (%p573_p9) target bundleno = 5118 (0x13fe), region = 100  ;;  %s2883_s26 = sld [smem:[#allocation10_spill]] (!%p573_p9) }
  0x19   : > { %s2884_s25 = sld [smem:[#allocation14_spill]] (!%p573_p9)  ;;  %s2854_s3 = smov (!%p573_p9), 72  }
  0x1a   : > { %s2885_s28 = sld [smem:[#allocation12_spill]] (!%p573_p9)  ;;  %s2862_s29 = smov (!%p573_p9), 80  }
  0x1b   : > { %s2886_s23 = sld [smem:[#allocation13_spill]] (!%p573_p9)  ;;  %s2861_s21 = smov (!%p573_p9), 112  }
  0x1c   : > { %s2887_s5 = sld [smem:[#allocation15_spill]] (!%p573_p9)  ;;  %s2898_s1 = smov (!%p573_p9), 48  }
  0x1d   : > { %s2466_s30 = scalar_select %p631_p10, %s2437_s2, 1  ;;  %vm645_vm0 = vcmask 261120   ;;  %v2296_v2 = vmov 32.0   ;;  %vm768_vm5 = vcmask 1043456   ;;  %vm726_vm6 = vcmask 64512  }
  0x1e   : > { %2182 = vrcp.f32 %v2296_v2  ;;  %s2889_s6 = sld [smem:[#allocation16_spill]]  ;;  %vm972_vm7 = vcmask 130048   ;;  %vm974_vm8 = vcmask 195584  }
  0x1f   : > { %s1887_s0 = sshll.u32 %s2466_s30, 3  ;;  %v2079_v14 = vld [vmem:[%s2884_s25 + $0x8] sm:$0xff]  ;;  %v2078_v15 = vld [vmem:[%s2884_s25] sm:$0xff] }
  0x20   : > { %s634_s27 = scalar_lea.vmem %s2883_s26, %s1887_s0  ;;  %713 = vmatpush.bf16.msra.mxu0 %v2079_v14  ;;  %v2164_v25 = vld [vmem:[%s2885_s28] ss:$0 sm:$0xff]  ;;  %s2860_s28 = smov 64  }
  0x21   : > { %v639_v0 = vld [vmem:[%s634_s27] sm:$0xff]  ;;  %s2866_s0 = smov 96   ;;  %s2888_s27 = sld [smem:[#allocation11_spill]] }
  0x22   : > { %v646_v1 = vsel %vm645_vm0, %v639_v0, 0.0  ;;  %v2165_v28 = vld [vmem:[%s2886_s23] ss:$0 sm:$0xff]  ;;  %s2867_s23 = smov 88   ;;  %s2855_s26 = smov 40  }
  0x23   : > { %647 = vadd.xlane.f32.xlu0 %v646_v1  ;;  %v2166_v32 = vld [vmem:[%s2887_s5] ss:$0 sm:$0xff] }
  0x24   : > { %v2183_v3 = vpop.eup %2182  ;;  %714 = vmatpush.bf16.msra.mxu0 %v2078_v15 }
  0x25   : > { %v650_v4 = vmul.f32 32.0, %v2183_v3  ;;  %vm654_vm1 = vweird.f32 %v2183_v3 }
  0x27   : > { %v651_v5 = vsub.f32 1.0, %v650_v4 }
  0x29   : > { %v652_v6 = vmul.f32 %v2183_v3, %v651_v5 }
  0x2b   : > { %v653_v7 = vadd.f32 %v2183_v3, %v652_v6 }
  0x2d   : > { %v2473_v8 = vsel %vm654_vm1, %v2183_v3, %v653_v7 }
  0x96   : > { %v648_v9 = vpop.xlane.xlu0 %647 }
  0x97   : > { %v656_v10 = vmul.f32 %v2473_v8, %v648_v9 }
  0x99   : > { %v657_v11 = vsub.f32 %v639_v0, %v656_v10 }
  0x9b   : > { %v658_v12 = vmul.f32 %v657_v11, %v657_v11 }
  0x9d   : > { %v659_v13 = vsel %vm645_vm0, %v658_v12, 0.0 }
  0x9e   : > { %660 = vadd.xlane.f32.xlu0 %v659_v13 }
 0x111   : > { %v661_v16 = vpop.xlane.xlu0 %660 }
 0x112   : > { %v662_v17 = vmul.f32 %v661_v16, %v2473_v8 }
 0x114   : > { %v663_v18 = vadd.f32 1e-12, %v662_v17 }
 0x116   : > { %2184 = vrsqrt.f32 %v663_v18  ;;  %vm670_vm3 = vweird.f32 %v663_v18 }
 0x11c   : > { %v2185_v19 = vpop.eup %2184 }
 0x11d   : > { %v665_v20 = vmul.f32 %v2185_v19, %v663_v18  ;;  %vm671_vm2 = vweird.f32 %v2185_v19 }
 0x11e   : > { %vm672_vm4 = vmor %vm670_vm3, %vm671_vm2 }
 0x11f   : > { %v666_v21 = vmul.f32 %v2185_v19, %v665_v20 }
 0x121   : > { %v667_v22 = vmul.f32 0.5, %v666_v21 }
 0x123   : > { %v668_v23 = vsub.f32 1.5, %v667_v22 }
 0x125   : > { %v669_v24 = vmul.f32 %v2185_v19, %v668_v23 }
 0x127   : > { %v673_v26 = vsel %vm672_vm4, %v2185_v19, %v669_v24 }
 0x128   : > { %v674_v27 = vmul.f32 %v673_v26, %v657_v11 }
 0x12a   : > { %v678_v29 = vmul.f32 %v2164_v25, %v674_v27 }
 0x12c   : > { %v2490_v30 = vadd.f32 %v2165_v28, %v678_v29 }
 0x12e   : > { %v683_v31 = vpack.c.bf16 %v2490_v30, %v2490_v30 }
 0x130   : > { %1896 = vmatmul.msk.bf16.vlgmr.msra.gmra.mxu0 %vm645_vm0, %v683_v31 }
 0x1ad   : > { %v716_v33 = vpop.f32.mrf.mxu0 }
 0x1ae   : > { %v717_v34 = vadd.f32 %v2166_v32, %v716_v33 }
 0x1b0   : > { %v720_v35 = vpack.c.bf16 %v717_v34, %v717_v34 }
 0x1b2   : > { %v722_v36 = vunpack.c.l.b16 %v720_v35 }
 0x1b4   : > { %v2498_v37 = vpack.c.b16 %v722_v36, %v722_v36 }
 0x1b5   : > { %v718_v38 = vpop.f32.mrf.mxu0 }
 0x1b6   : > { %787 = vrot.lane.b32.xlu0 %v2498_v37, %s2867_s23  ;;  %763 = vrot.lane.b32.xlu2 %v2498_v37, %s2860_s28  ;;  %s2896_s28 = smov 72   ;;  %s2899_s23 = smov 56  }
 0x1b7   : > { %724 = vrot.lane.b32.xlu1 %v2498_v37, %s2866_s0  ;;  %s2893_s0 = smov 112  }
 0x1be   : > { %903 = vrot.lane.b32.xlu0 %v2498_v37, %s2854_s3  ;;  %s637_s3 = scalar_lea.vmem %s2888_s27, %s2466_s30  ;;  %s2859_s30 = smov 120  }
 0x1bf   : > { %v640_v48 = vld [vmem:[%s637_s3] sm:$0x1]  ;;  %s2858_s3 = smov 104   ;;  %s2857_s27 = smov 48  }
 0x1c0   : > { %v641_v49 = vsub.f32 1.0, %v640_v48 }
 0x1c2   : > { %v642_v50 = vmul.f32 -1e+09, %v641_v49 }
 0x1c4   : > { %v2519_v51 = vperm.slane %v642_v50, 0 }
 0x1c6   : > { %845 = vrot.lane.b32.xlu0 %v2498_v37, %s2862_s29  ;;  %s2892_s29 = smov 80  }
 0x210   : > { %v764_v39 = vpop.permute.xlu2 %763 }
 0x211   : > { %v770_v40 = vsel %vm768_vm5, %v764_v39, 0 }
 0x212   : > { %779 = vmatpush.bf16.msra.mxu3 %v770_v40 }
 0x228   : > { %v788_v41 = vpop.permute.xlu0 %787 }
 0x229   : > { %v725_v42 = vpop.permute.xlu1 %724  ;;  %v793_v43 = vsel %vm726_vm6, %v788_v41, 0 }
 0x22a   : > { %v731_v44 = vsel %vm726_vm6, %v725_v42, 0  ;;  %802 = vmatpush.bf16.xpose.msrb.mxu3 %v793_v43 }
 0x22b   : > { %740 = vmatpush.bf16.xpose.msra.mxu1 %v731_v44 }
 0x230   : > { %v904_v45 = vpop.permute.xlu0 %903 }
 0x231   : > { %v909_v3 = vsel %vm726_vm6, %v904_v45, 0 }
 0x232   : > { %1897 = vmatmul.msk.bf16.vlgmr.msra.gmra.mxu1 %vm726_vm6, %v720_v35 }
 0x238   : > { %v846_v46 = vpop.permute.xlu0 %845 }
 0x239   : > { %v851_v47 = vsel %vm726_vm6, %v846_v46, 0 }
 0x23a   : > { %860 = vmatpush.bf16.xpose.msrb.mxu0 %v851_v47 }
 0x2af   : > { %v742_v52 = vpop.f32.mrf.mxu1 }
 0x2b0   : > { %v746_v53 = vmul.f32 0.35355338, %v742_v52 }
 0x2b2   : > { %v750_v54 = vadd.f32 %v2519_v51, %v746_v53 }
 0x2b4   : > { %v751_v55 = vsel %vm726_vm6, %v750_v54, -inf }
 0x2b5   : > { %752 = vmax.xlane.f32.xlu1 %v751_v55 }
 0x2b7   : > { %v744_v56 = vpop.f32.mrf.mxu1 }
 0x328   : > { %v753_v57 = vpop.xlane.xlu1 %752 }
 0x329   : > { %v754_v58 = vsub.f32 %v750_v54, %v753_v57 }
 0x32b   : > { %v755_v59 = vmul.f32 1.442695, %v754_v58 }
 0x32d   : > { %2186 = vpow2.f32 %v755_v59 }
 0x333   : > { %v2187_v60 = vpop.eup %2186 }
 0x334   : > { %v757_v61 = vsel %vm726_vm6, %v2187_v60, 0.0 }
 0x335   : > { %758 = vadd.xlane.f32.xlu2 %v757_v61 }
 0x34d   : > { %785 = vrot.lane.b32.xlu2 %v2498_v37, %s2859_s30  ;;  %s2897_s30 = smov 104  }
 0x355   : > { %901 = vrot.lane.b32.xlu2 %v2498_v37, %s2858_s3  ;;  %s2864_s3 = smov 24  }
 0x35d   : > { %843 = vrot.lane.b32.xlu2 %v2498_v37, %s2861_s21  ;;  %s2895_s21 = smov 120  }
 0x3a8   : > { %v759_v62 = vpop.xlane.xlu2 %758 }
 0x3a9   : > { %2188 = vrcp.f32 %v759_v62 }
 0x3af   : > { %v2189_v63 = vpop.eup %2188 }
 0x3b0   : > { %v786_v0 = vpop.permute.xlu2 %785  ;;  %v761_v1 = vmul.f32 %v2189_v63, %v2187_v60 }
 0x3b2   : > { %v762_v2 = vpack.c.bf16 %v761_v1, %v761_v1  ;;  %v2081_v1 = vld [vmem:[%s2889_s6 + $0x8] sm:$0xff] }
 0x3b3   : > { %1006 = vmatpush.bf16.msra.mxu0 %v2081_v1 }
 0x3b4   : > { %1898 = vmatmul.msk.bf16.vlgmr.msra.gmra.mxu3 %vm726_vm6, %v762_v2  ;;  %v2080_v2 = vld [vmem:[%s2889_s6] sm:$0xff] }
 0x3b5   : > { %918 = vmatpush.bf16.xpose.msra.mxu3 %v909_v3 }
 0x3b7   : > { %1007 = vmatpush.bf16.msra.mxu0 %v2080_v2 }
 0x3b8   : > { %v902_v4 = vpop.permute.xlu2 %901 }
 0x3c0   : > { %v844_v5 = vpop.permute.xlu2 %843 }
 0x3c1   : > { %1901 = vmatmul.msk.bf16.vlgmr.msrb.gmra.mxu0 %vm726_vm6, %v844_v5 }
 0x3c4   : > { %1899 = vmatmul.msk.bf16.vlgmr.msrb.gmra.mxu3 %vm726_vm6, %v786_v0 }
 0x3d4   : > { %1903 = vmatmul.msk.bf16.vlgmr.msra.gmra.mxu3 %vm726_vm6, %v902_v4 }
 0x437   : > { %v2535_v6 = vpop.f32.mrf.mxu3 }
 0x43e   : > { %v862_v7 = vpop.f32.mrf.mxu0 }
 0x43f   : > { %v866_v9 = vmul.f32 0.35355338, %v862_v7  ;;  %v783_v10 = vpop.f32.mrf.mxu3 }
 0x441   : > { %v867_v11 = vadd.f32 %v866_v9, %v2519_v51 }
 0x443   : > { %v868_v12 = vsel %vm726_vm6, %v867_v11, -inf }
 0x444   : > { %869 = vmax.xlane.f32.xlu2 %v868_v12  ;;  %v2167_v12 = vld [vmem:[%s2835_s7] ss:$0 sm:$0xff] }
 0x446   : > { %v864_v13 = vpop.f32.mrf.mxu0 }
 0x447   : > { %v804_v14 = vpop.f32.mrf.mxu3 }
 0x448   : > { %v808_v15 = vmul.f32 0.35355338, %v804_v14 }
 0x44a   : > { %v809_v16 = vadd.f32 %v808_v15, %v2519_v51 }
 0x44c   : > { %v810_v17 = vsel %vm726_vm6, %v809_v16, -inf }
 0x44d   : > { %811 = vmax.xlane.f32.xlu1 %v810_v17 }
 0x44f   : > { %v806_v18 = vpop.f32.mrf.mxu3 }
 0x457   : > { %v920_v19 = vpop.f32.mrf.mxu3 }
 0x458   : > { %v924_v20 = vmul.f32 0.35355338, %v920_v19 }
 0x45a   : > { %v925_v21 = vadd.f32 %v924_v20, %v2519_v51 }
 0x45c   : > { %938 = vrot.lane.b32.xlu2 %v2498_v37, %s2855_s26  ;;  %v926_v22 = vsel %vm726_vm6, %v925_v21, -inf  ;;  %s2856_s26 = smov 56  }
 0x45d   : > { %927 = vmax.xlane.f32.xlu0 %v926_v22  ;;  %v2083_v22 = vld [vmem:[%s2838_s10 + $0x8] sm:$0xff] }
 0x45f   : > { %v922_v23 = vpop.f32.mrf.mxu3 }
 0x460   : > { %v2091_v23 = vld [vmem:[%s2840_s12 + $0x38] sm:$0xff] }
 0x461   : > { %1161 = vmatpush.bf16.msrb.mxu3 %v2091_v23  ;;  %v2173_v23 = vld [vmem:[%s2843_s15] ss:$0 sm:$0xff] }
 0x4b7   : > { %v870_v24 = vpop.xlane.xlu2 %869 }
 0x4b8   : > { %v871_v25 = vsub.f32 %v867_v11, %v870_v24 }
 0x4ba   : > { %v872_v26 = vmul.f32 1.442695, %v871_v25 }
 0x4bc   : > { %2190 = vpow2.f32 %v872_v26  ;;  %v2090_v26 = vld [vmem:[%s2840_s12 + $0x30] sm:$0xff] }
 0x4bd   : > { %1162 = vmatpush.bf16.msrb.mxu3 %v2090_v26 }
 0x4bf   : > { %v939_v48 = vpop.permute.xlu2 %938 }
 0x4c0   : > { %v812_v27 = vpop.xlane.xlu1 %811  ;;  %v944_v53 = vsel %vm768_vm5, %v939_v48, 0  ;;  %v2170_v48 = vld [vmem:[%s2839_s11] ss:$0 sm:$0xff] }
 0x4c1   : > { %v813_v28 = vsub.f32 %v809_v16, %v812_v27 }
 0x4c2   : > { %v2191_v29 = vpop.eup %2190 }
 0x4c3   : > { %v814_v31 = vmul.f32 1.442695, %v813_v28  ;;  %v874_v32 = vsel %vm726_vm6, %v2191_v29, 0.0 }
 0x4c4   : > { %875 = vadd.xlane.f32.xlu0 %v874_v32 }
 0x4c5   : > { %2192 = vpow2.f32 %v814_v31 }
 0x4cb   : > { %v2193_v33 = vpop.eup %2192 }
 0x4cc   : > { %v816_v34 = vsel %vm726_vm6, %v2193_v33, 0.0 }
 0x4cd   : > { %817 = vadd.xlane.f32.xlu1 %v816_v34 }
 0x4d0   : > { %v928_v35 = vpop.xlane.xlu0 %927 }
 0x4d1   : > { %v929_v36 = vsub.f32 %v925_v21, %v928_v35  ;;  %v2168_v35 = vld [vmem:[%s2836_s8] ss:$0 sm:$0xff] }
 0x4d3   : > { %v930_v38 = vmul.f32 1.442695, %v929_v36 }
 0x4d5   : > { %2194 = vpow2.f32 %v930_v38  ;;  %v2169_v38 = vld [vmem:[%s2837_s9] ss:$0 sm:$0xff] }
 0x4d8   : > { %880 = vrot.lane.b32.xlu0 %v2498_v37, %s2857_s27  ;;  %s2865_s27 = smov 8  }
 0x4db   : > { %v2195_v39 = vpop.eup %2194 }
 0x4dc   : > { %v932_v40 = vsel %vm726_vm6, %v2195_v39, 0.0 }
 0x4e6   : > { %822 = vrot.lane.b32.xlu1 %v2498_v37, %s2856_s26  ;;  %s2863_s26 = smov 16  }
 0x510   : > { %933 = vadd.xlane.f32.xlu1 %v932_v40 }
 0x537   : > { %v876_v41 = vpop.xlane.xlu0 %875 }
 0x538   : > { %2196 = vrcp.f32 %v876_v41 }
 0x53e   : > { %v2197_v42 = vpop.eup %2196 }
 0x53f   : > { %v878_v43 = vmul.f32 %v2197_v42, %v2191_v29 }
 0x540   : > { %v818_v45 = vpop.xlane.xlu1 %817 }
 0x541   : > { %v879_v47 = vpack.c.bf16 %v878_v43, %v878_v43  ;;  %2198 = vrcp.f32 %v818_v45  ;;  %v2089_v43 = vld [vmem:[%s2840_s12 + $0x28] sm:$0xff]  ;;  %v2087_v45 = vld [vmem:[%s2840_s12 + $0x18] sm:$0xff] }
 0x542   : > { %1163 = vmatpush.bf16.msrb.mxu3 %v2089_v43 }
 0x547   : > { %v2199_v37 = vpop.eup %2198 }
 0x548   : > { %v820_v49 = vmul.f32 %v2199_v37, %v2193_v33  ;;  %v2084_v37 = vld [vmem:[%s2840_s12] sm:$0xff] }
 0x54a   : > { %v881_v44 = vpop.permute.xlu0 %880  ;;  %v821_v54 = vpack.c.bf16 %v820_v49, %v820_v49 }
 0x54b   : > { %v886_v46 = vsel %vm768_vm5, %v881_v44, 0  ;;  %v2088_v44 = vld [vmem:[%s2840_s12 + $0x20] sm:$0xff] }
 0x54c   : > { %895 = vmatpush.bf16.msrb.mxu1 %v886_v46  ;;  %1164 = vmatpush.bf16.msrb.mxu3 %v2088_v44  ;;  %v2086_v46 = vld [vmem:[%s2840_s12 + $0x10] sm:$0xff] }
 0x54f   : > { %1902 = vmatmul.msk.bf16.vlgmr.msrb.gmra.mxu1 %vm726_vm6, %v879_v47  ;;  %v2085_v47 = vld [vmem:[%s2840_s12 + $0x8] sm:$0xff] }
 0x550   : > { %1076 = vmatpush.bf16.msra.mxu1 %v2083_v22  ;;  %1165 = vmatpush.bf16.msrb.mxu3 %v2087_v45  ;;  %v2172_v22 = vld [vmem:[%s2842_s14] ss:$0 sm:$0xff] }
 0x554   : > { %1166 = vmatpush.bf16.msrb.mxu3 %v2086_v46 }
 0x558   : > { %v823_v50 = vpop.permute.xlu1 %822  ;;  %1167 = vmatpush.bf16.msrb.mxu3 %v2085_v47 }
 0x559   : > { %v828_v52 = vsel %vm768_vm5, %v823_v50, 0 }
 0x55a   : > { %837 = vmatpush.bf16.msra.mxu2 %v828_v52 }
 0x55c   : > { %1168 = vmatpush.bf16.msrb.mxu3 %v2084_v37 }
 0x55d   : > { %1900 = vmatmul.msk.bf16.vlgmr.msra.gmra.mxu2 %vm726_vm6, %v821_v54 }
 0x55e   : > { %953 = vmatpush.bf16.msrb.mxu2 %v944_v53 }
 0x583   : > { %v934_v55 = vpop.xlane.xlu1 %933 }
 0x584   : > { %2200 = vrcp.f32 %v934_v55 }
 0x58a   : > { %v2201_v56 = vpop.eup %2200 }
 0x58b   : > { %v936_v57 = vmul.f32 %v2201_v56, %v2195_v39 }
 0x58d   : > { %v937_v58 = vpack.c.bf16 %v936_v57, %v936_v57 }
 0x58f   : > { %1904 = vmatmul.msk.bf16.vlgmr.msrb.gmra.mxu2 %vm726_vm6, %v937_v58 }
 0x5cc   : > { %v897_v59 = vpop.f32.mrf.mxu1 }
 0x5cd   : > { %964 = vrot.lane.b32.xlu0 %v897_v59, %s2863_s26  ;;  %s2891_s26 = smov 96  }
 0x5d4   : > { %v899_v60 = vpop.f32.mrf.mxu1 }
 0x5e0   : > { %v839_v61 = vpop.f32.mrf.mxu2 }
 0x5e1   : > { %960 = vrot.lane.b32.xlu2 %v839_v61, %s2865_s27  ;;  %s2894_s27 = smov 64  }
 0x5e8   : > { %v841_v62 = vpop.f32.mrf.mxu2 }
 0x612   : > { %v955_v63 = vpop.f32.mrf.mxu2 }
 0x613   : > { %968 = vrot.lane.b32.xlu2 %v955_v63, %s2864_s3  ;;  %v2171_v63 = vld [vmem:[%s2841_s13] ss:$0 sm:$0xff]  ;;  %s2890_s3 = smov 88  }
 0x61a   : > { %v957_v0 = vpop.f32.mrf.mxu2 }
 0x63b   : > { %v961_v3 = vpop.permute.xlu2 %960 }
 0x63c   : > { %v971_v5 = vsel %vm726_vm6, %v2535_v6, %v961_v3 }
 0x63f   : > { %v965_v4 = vpop.permute.xlu0 %964 }
 0x640   : > { %v973_v7 = vsel %vm972_vm7, %v971_v5, %v965_v4 }
 0x66d   : > { %v969_v9 = vpop.permute.xlu2 %968 }
 0x66e   : > { %v975_v10 = vsel %vm974_vm8, %v973_v7, %v969_v9 }
 0x66f   : > { %v976_v11 = vpack.c.bf16 %v975_v10, %v975_v10 }
 0x671   : > { %1913 = vmatmul.msk.bf16.vlgmr.msra.gmra.mxu0 %vm645_vm0, %v976_v11 }
 0x6ee   : > { %v1009_v13 = vpop.f32.mrf.mxu0 }
 0x6ef   : > { %v1010_v14 = vadd.f32 %v2167_v12, %v1009_v13  ;;  %v2093_v12 = vld [vmem:[%s2884_s25 + $0x18] sm:$0xff]  ;;  %v2092_v13 = vld [vmem:[%s2884_s25 + $0x10] sm:$0xff] }
 0x6f0   : > { %1239 = vmatpush.bf16.msra.mxu2 %v2093_v12 }
 0x6f1   : > { %v1013_v15 = vadd.f32 %v1010_v14, %v2490_v30  ;;  %v2082_v30 = vld [vmem:[%s2838_s10] sm:$0xff] }
 0x6f2   : > { %1077 = vmatpush.bf16.msra.mxu1 %v2082_v30 }
 0x6f3   : > { %v1016_v16 = vsel %vm645_vm0, %v1013_v15, 0.0 }
 0x6f4   : > { %1017 = vadd.xlane.f32.xlu0 %v1016_v16  ;;  %1240 = vmatpush.bf16.msra.mxu2 %v2092_v13 }
 0x6f6   : > { %v1011_v6 = vpop.f32.mrf.mxu0 }
 0x767   : > { %v1018_v17 = vpop.xlane.xlu0 %1017 }
 0x768   : > { %v1019_v18 = vmul.f32 %v1018_v17, %v2473_v8 }
 0x76a   : > { %v1020_v19 = vsub.f32 %v1013_v15, %v1019_v18 }
 0x76c   : > { %v1021_v20 = vmul.f32 %v1020_v19, %v1020_v19 }
 0x76e   : > { %v1022_v21 = vsel %vm645_vm0, %v1021_v20, 0.0 }
 0x76f   : > { %1023 = vadd.xlane.f32.xlu1 %v1022_v21 }
 0x7e2   : > { %v1024_v24 = vpop.xlane.xlu1 %1023 }
 0x7e3   : > { %v1025_v25 = vmul.f32 %v1024_v24, %v2473_v8 }
 0x7e5   : > { %v1026_v27 = vadd.f32 1e-12, %v1025_v25 }
 0x7e7   : > { %2202 = vrsqrt.f32 %v1026_v27  ;;  %vm1033_vm10 = vweird.f32 %v1026_v27 }
 0x7ed   : > { %v2203_v28 = vpop.eup %2202 }
 0x7ee   : > { %v1028_v29 = vmul.f32 %v2203_v28, %v1026_v27  ;;  %vm1034_vm9 = vweird.f32 %v2203_v28 }
 0x7ef   : > { %vm1035_vm11 = vmor %vm1033_vm10, %vm1034_vm9 }
 0x7f0   : > { %v1029_v31 = vmul.f32 %v2203_v28, %v1028_v29 }
 0x7f2   : > { %v1030_v32 = vmul.f32 0.5, %v1029_v31 }
 0x7f4   : > { %v1031_v33 = vsub.f32 1.5, %v1030_v32 }
 0x7f6   : > { %v1032_v34 = vmul.f32 %v2203_v28, %v1031_v33 }
 0x7f8   : > { %v1036_v36 = vsel %vm1035_vm11, %v2203_v28, %v1032_v34  ;;  %v2174_v28 = vld [vmem:[%s2887_s5 + $0x1] ss:$0 sm:$0xff] }
 0x7f9   : > { %v1037_v39 = vmul.f32 %v1036_v36, %v1020_v19 }
 0x7fb   : > { %v1041_v40 = vmul.f32 %v2168_v35, %v1037_v39 }
 0x7fd   : > { %v1045_v41 = vadd.f32 %v2169_v38, %v1041_v40 }
 0x7ff   : > { %v1046_v42 = vpack.c.bf16 %v1045_v41, %v1045_v41 }
 0x801   : > { %1922 = vmatmul.msk.bf16.vlgmr.msra.gmra.mxu1 %vm645_vm0, %v1046_v42 }
 0x87e   : > { %v1079_v49 = vpop.f32.mrf.mxu1 }
 0x87f   : > { %v1080_v50 = vadd.f32 %v2170_v48, %v1079_v49 }
 0x881   : > { %v1084_v52 = vmul.f32 0.044715, %v1080_v50  ;;  %v1083_v59 = vmul.f32 0.5, %v1080_v50 }
 0x883   : > { %v1085_v53 = vmul.f32 %v1084_v52, %v1080_v50 }
 0x885   : > { %v1086_v54 = vmul.f32 %v1085_v53, %v1080_v50 }
 0x886   : > { %v1081_v55 = vpop.f32.mrf.mxu1 }
 0x887   : > { %v1087_v56 = vadd.f32 %v1086_v54, %v1080_v50 }
 0x889   : > { %v1088_v57 = vmul.f32 0.7978846, %v1087_v56 }
 0x88b   : > { %2204 = vtanh.f32 %v1088_v57 }
 0x891   : > { %v2205_v58 = vpop.eup %2204 }
 0x892   : > { %v1090_v60 = vadd.f32 1.0, %v2205_v58 }
 0x894   : > { %v1091_v61 = vmul.f32 %v1090_v60, %v1083_v59 }
 0x896   : > { %v1092_v62 = vpack.c.bf16 %v1091_v61, %v1091_v61 }
 0x898   : > { %1169 = vmatmul.bf16.vlgmr.msrb.gmra.mxu3 %v1092_v62 }
 0x91b   : > { %v1170_v0 = vpop.f32.mrf.mxu3 }
 0x91c   : > { %v1171_v1 = vadd.f32 %v2171_v63, %v1170_v0 }
 0x91e   : > { %v1174_v2 = vadd.f32 %v1171_v1, %v1045_v41 }
 0x920   : > { %v1177_v3 = vsel %vm645_vm0, %v1174_v2, 0.0 }
 0x921   : > { %1178 = vadd.xlane.f32.xlu2 %v1177_v3 }
 0x923   : > { %v1172_v4 = vpop.f32.mrf.mxu3 }
 0x994   : > { %v1179_v5 = vpop.xlane.xlu2 %1178 }
 0x995   : > { %v1180_v7 = vmul.f32 %v1179_v5, %v2473_v8 }
 0x997   : > { %v1181_v9 = vsub.f32 %v1174_v2, %v1180_v7 }
 0x999   : > { %v1182_v10 = vmul.f32 %v1181_v9, %v1181_v9 }
 0x99b   : > { %v1183_v11 = vsel %vm645_vm0, %v1182_v10, 0.0 }
 0x99c   : > { %1184 = vadd.xlane.f32.xlu1 %v1183_v11 }
 0xa0f   : > { %v1185_v14 = vpop.xlane.xlu1 %1184 }
 0xa10   : > { %v1186_v15 = vmul.f32 %v1185_v14, %v2473_v8 }
 0xa12   : > { %v1187_v16 = vadd.f32 1e-12, %v1186_v15 }
 0xa14   : > { %2206 = vrsqrt.f32 %v1187_v16  ;;  %vm1194_vm13 = vweird.f32 %v1187_v16 }
 0xa1a   : > { %v2207_v6 = vpop.eup %2206 }
 0xa1b   : > { %v1189_v17 = vmul.f32 %v2207_v6, %v1187_v16  ;;  %vm1195_vm12 = vweird.f32 %v2207_v6 }
 0xa1c   : > { %vm1196_vm14 = vmor %vm1194_vm13, %vm1195_vm12 }
 0xa1d   : > { %v1190_v18 = vmul.f32 %v2207_v6, %v1189_v17 }
 0xa1f   : > { %v1191_v19 = vmul.f32 0.5, %v1190_v18 }
 0xa21   : > { %v1192_v20 = vsub.f32 1.5, %v1191_v19 }
 0xa23   : > { %v1193_v21 = vmul.f32 %v2207_v6, %v1192_v20 }
 0xa25   : > { %v1197_v30 = vsel %vm1196_vm14, %v2207_v6, %v1193_v21 }
 0xa26   : > { %v1198_v24 = vmul.f32 %v1197_v30, %v1181_v9 }
 0xa28   : > { %v1202_v25 = vmul.f32 %v2172_v22, %v1198_v24 }
 0xa2a   : > { %v2639_v26 = vadd.f32 %v2173_v23, %v1202_v25 }
 0xa2c   : > { %v1207_v27 = vpack.c.bf16 %v2639_v26, %v2639_v26 }
 0xa2e   : > { %1968 = vmatmul.msk.bf16.vlgmr.msra.gmra.mxu2 %vm645_vm0, %v1207_v27 }
 0xab1   : > { %v1242_v29 = vpop.f32.mrf.mxu2 }
 0xab2   : > { %v1243_v31 = vadd.f32 %v2174_v28, %v1242_v29 }
 0xab4   : > { %v1246_v32 = vpack.c.bf16 %v1243_v31, %v1243_v31 }
 0xab6   : > { %v1248_v33 = vunpack.c.l.b16 %v1246_v32 }
 0xab8   : > { %v2647_v34 = vpack.c.b16 %v1248_v33, %v1248_v33 }
 0xab9   : > { %v1244_v35 = vpop.f32.mrf.mxu2 }
 0xaba   : > { %1308 = vrot.lane.b32.xlu2 %v2647_v34, %s2890_s3  ;;  %1250 = vrot.lane.b32.xlu1 %v2647_v34, %s2891_s26  ;;  %s2900_s3 = smov 40   ;;  %s2901_s26 = smov 8  }
 0xac2   : > { %1366 = vrot.lane.b32.xlu2 %v2647_v34, %s2892_s29  ;;  %s2902_s29 = smov 24  }
 0xaca   : > { %1364 = vrot.lane.b32.xlu2 %v2647_v34, %s2893_s0 }
 0xb14   : > { %v1309_v36 = vpop.permute.xlu2 %1308 }
 0xb15   : > { %v1314_v38 = vsel %vm726_vm6, %v1309_v36, 0 }
 0xb16   : > { %1323 = vmatpush.bf16.xpose.msrb.mxu2 %v1314_v38 }
 0xb1c   : > { %v1367_v50 = vpop.permute.xlu2 %1366 }
 0xb1d   : > { %v1372_v54 = vsel %vm726_vm6, %v1367_v50, 0 }
 0xb24   : > { %v1365_v63 = vpop.permute.xlu2 %1364 }
 0xb2c   : > { %v1251_v39 = vpop.permute.xlu1 %1250 }
 0xb2d   : > { %v1256_v40 = vsel %vm726_vm6, %v1251_v39, 0 }
 0xb2e   : > { %1265 = vmatpush.bf16.xpose.msrb.mxu0 %v1256_v40 }
 0xb35   : > { %1969 = vmatmul.msk.bf16.vlgmr.msrb.gmra.mxu0 %vm726_vm6, %v1246_v32 }
 0xbb2   : > { %v1267_v41 = vpop.f32.mrf.mxu0 }
 0xbb3   : > { %v1271_v42 = vmul.f32 0.35355338, %v1267_v41 }
 0xbb5   : > { %v1272_v43 = vadd.f32 %v1271_v42, %v2519_v51 }
 0xbb7   : > { %v1273_v44 = vsel %vm726_vm6, %v1272_v43, -inf }
 0xbb8   : > { %1274 = vmax.xlane.f32.xlu0 %v1273_v44 }
 0xbba   : > { %v1269_v45 = vpop.f32.mrf.mxu0 }
 0xbcc   : > { %1285 = vrot.lane.b32.xlu0 %v2647_v34, %s2894_s27  ;;  %s2252_s27 = scalar_lea.hbm %s2848_s20, 2 }
 0xbd4   : > { %1306 = vrot.lane.b32.xlu0 %v2647_v34, %s2895_s21  ;;  %s2903_s21 = smov 16  }
 0xbdc   : > { %1424 = vrot.lane.b32.xlu0 %v2647_v34, %s2896_s28 }
 0xbe4   : > { %1422 = vrot.lane.b32.xlu0 %v2647_v34, %s2897_s30 }
 0xc2b   : > { %v1275_v46 = vpop.xlane.xlu0 %1274 }
 0xc2c   : > { %v1276_v47 = vsub.f32 %v1272_v43, %v1275_v46 }
 0xc2e   : > { %v1277_v37 = vmul.f32 1.442695, %v1276_v47 }
 0xc30   : > { %2208 = vpow2.f32 %v1277_v37 }
 0xc36   : > { %v2209_v48 = vpop.eup %2208 }
 0xc37   : > { %v1279_v49 = vsel %vm726_vm6, %v2209_v48, 0.0 }
 0xc38   : > { %1280 = vadd.xlane.f32.xlu1 %v1279_v49 }
 0xc3e   : > { %v1286_v52 = vpop.permute.xlu0 %1285 }
 0xc3f   : > { %v1291_v53 = vsel %vm768_vm5, %v1286_v52, 0 }
 0xc40   : > { %1300 = vmatpush.bf16.msrb.mxu1 %v1291_v53 }
 0xc44   : > { %1381 = vmatpush.bf16.xpose.msra.mxu1 %v1372_v54 }
 0xc46   : > { %v1307_v55 = vpop.permute.xlu0 %1306 }
 0xc47   : > { %1971 = vmatmul.msk.bf16.vlgmr.msrb.gmra.mxu2 %vm726_vm6, %v1307_v55 }
 0xc4e   : > { %v1425_v56 = vpop.permute.xlu0 %1424 }
 0xc4f   : > { %v1430_v57 = vsel %vm726_vm6, %v1425_v56, 0  ;;  %v2095_v56 = vld [vmem:[%s2889_s6 + $0x18] sm:$0xff] }
 0xc50   : > { %1439 = vmatpush.bf16.xpose.msra.mxu2 %v1430_v57 }
 0xc56   : > { %v1423_v58 = vpop.permute.xlu0 %1422 }
 0xc57   : > { %1975 = vmatmul.msk.bf16.vlgmr.msra.gmra.mxu2 %vm726_vm6, %v1423_v58 }
 0xcab   : > { %v1281_v59 = vpop.xlane.xlu1 %1280 }
 0xcac   : > { %2210 = vrcp.f32 %v1281_v59  ;;  %v2094_v59 = vld [vmem:[%s2889_s6 + $0x10] sm:$0xff] }
 0xcb2   : > { %v2211_v60 = vpop.eup %2210 }
 0xcb3   : > { %v1283_v61 = vmul.f32 %v2211_v60, %v2209_v48 }
 0xcb5   : > { %v1284_v62 = vpack.c.bf16 %v1283_v61, %v1283_v61 }
 0xcb7   : > { %1970 = vmatmul.msk.bf16.vlgmr.msrb.gmra.mxu1 %vm726_vm6, %v1284_v62 }
 0xcb8   : > { %1527 = vmatpush.bf16.msrb.mxu1 %v2095_v56 }
 0xcbc   : > { %1528 = vmatpush.bf16.msrb.mxu1 %v2094_v59 }
 0xcc7   : > { %1973 = vmatmul.msk.bf16.vlgmr.msra.gmra.mxu1 %vm726_vm6, %v1365_v63 }
 0xcca   : > { %v1325_v0 = vpop.f32.mrf.mxu2 }
 0xccb   : > { %v1329_v1 = vmul.f32 0.35355338, %v1325_v0 }
 0xccd   : > { %v1330_v2 = vadd.f32 %v1329_v1, %v2519_v51 }
 0xccf   : > { %v1331_v3 = vsel %vm726_vm6, %v1330_v2, -inf }
 0xcd0   : > { %1332 = vmax.xlane.f32.xlu1 %v1331_v3  ;;  %v2175_v3 = vld [vmem:[%s2835_s7 + $0x1] ss:$0 sm:$0xff] }
 0xcd2   : > { %v1327_v4 = vpop.f32.mrf.mxu2 }
 0xcda   : > { %v1441_v5 = vpop.f32.mrf.mxu2 }
 0xcdb   : > { %v1445_v7 = vmul.f32 0.35355338, %v1441_v5 }
 0xcdd   : > { %v1446_v9 = vadd.f32 %v1445_v7, %v2519_v51 }
 0xcdf   : > { %v1447_v10 = vsel %vm726_vm6, %v1446_v9, -inf }
 0xce0   : > { %1448 = vmax.xlane.f32.xlu0 %v1447_v10 }
 0xce2   : > { %v1443_v11 = vpop.f32.mrf.mxu2 }
 0xcf4   : > { %1401 = vrot.lane.b32.xlu0 %v2647_v34, %s2898_s1 }
 0xd34   : > { %v2684_v12 = vpop.f32.mrf.mxu1 }
 0xd3c   : > { %v1304_v13 = vpop.f32.mrf.mxu1 }
 0xd43   : > { %v1333_v14 = vpop.xlane.xlu1 %1332 }
 0xd44   : > { %v1334_v15 = vsub.f32 %v1330_v2, %v1333_v14  ;;  %v1383_v16 = vpop.f32.mrf.mxu1 }
 0xd45   : > { %v1387_v6 = vmul.f32 0.35355338, %v1383_v16  ;;  %v2097_v16 = vld [vmem:[%s2838_s10 + $0x18] sm:$0xff] }
 0xd46   : > { %v1335_v17 = vmul.f32 1.442695, %v1334_v15 }
 0xd47   : > { %v1388_v18 = vadd.f32 %v1387_v6, %v2519_v51  ;;  %v2105_v6 = vld [vmem:[%s2840_s12 + $0x78] sm:$0xff] }
 0xd48   : > { %2212 = vpow2.f32 %v1335_v17  ;;  %1688 = vmatpush.bf16.msrb.mxu2 %v2105_v6 }
 0xd49   : > { %v1389_v19 = vsel %vm726_vm6, %v1388_v18, -inf }
 0xd4a   : > { %1390 = vmax.xlane.f32.xlu2 %v1389_v19  ;;  %v2104_v19 = vld [vmem:[%s2840_s12 + $0x70] sm:$0xff] }
 0xd4c   : > { %v1385_v20 = vpop.f32.mrf.mxu1  ;;  %1689 = vmatpush.bf16.msrb.mxu2 %v2104_v19  ;;  %v2109_v19 = vld [vmem:[%s2846_s18 + $0x8] sm:$0xff] }
 0xd4d   : > { %1798 = vmatpush.bf16.msra.mxu1 %v2109_v19 }
 0xd4e   : > { %v2213_v21 = vpop.eup %2212 }
 0xd4f   : > { %v1337_v22 = vsel %vm726_vm6, %v2213_v21, 0.0 }
 0xd50   : > { %1338 = vadd.xlane.f32.xlu1 %v1337_v22 }
 0xd53   : > { %v1449_v30 = vpop.xlane.xlu0 %1448 }
 0xd54   : > { %v1450_v23 = vsub.f32 %v1446_v9, %v1449_v30 }
 0xd56   : > { %v1451_v24 = vmul.f32 1.442695, %v1450_v23 }
 0xd58   : > { %2214 = vpow2.f32 %v1451_v24 }
 0xd5e   : > { %v2215_v25 = vpop.eup %2214 }
 0xd5f   : > { %v1453_v27 = vsel %vm726_vm6, %v2215_v25, 0.0 }
 0xd60   : > { %1454 = vadd.xlane.f32.xlu2 %v1453_v27  ;;  %v2176_v27 = vld [vmem:[%s2836_s8 + $0x1] ss:$0 sm:$0xff] }
 0xd66   : > { %v1402_v28 = vpop.permute.xlu0 %1401 }
 0xd67   : > { %v1407_v51 = vsel %vm768_vm5, %v1402_v28, 0 }
 0xd68   : > { %1416 = vmatpush.bf16.msra.mxu3 %v1407_v51  ;;  %v2177_v51 = vld [vmem:[%s2837_s9 + $0x1] ss:$0 sm:$0xff] }
 0xd69   : > { %1343 = vrot.lane.b32.xlu1 %v2647_v34, %s2899_s23 }
 0xd6c   : > { %1601 = vmatpush.bf16.msrb.mxu3 %v2097_v16 }
 0xd78   : > { %1459 = vrot.lane.b32.xlu2 %v2647_v34, %s2900_s3 }
 0xdbd   : > { %v1391_v29 = vpop.xlane.xlu2 %1390 }
 0xdbe   : > { %v1392_v31 = vsub.f32 %v1388_v18, %v1391_v29 }
 0xdc0   : > { %v1393_v32 = vmul.f32 1.442695, %v1392_v31 }
 0xdc2   : > { %2216 = vpow2.f32 %v1393_v32 }
 0xdc3   : > { %v1339_v36 = vpop.xlane.xlu1 %1338 }
 0xdc4   : > { %2218 = vrcp.f32 %v1339_v36  ;;  %v2102_v36 = vld [vmem:[%s2840_s12 + $0x60] sm:$0xff] }
 0xdc8   : > { %v2217_v33 = vpop.eup %2216 }
 0xdc9   : > { %v1395_v35 = vsel %vm726_vm6, %v2217_v33, 0.0 }
 0xdca   : > { %1396 = vadd.xlane.f32.xlu1 %v1395_v35  ;;  %v2219_v39 = vpop.eup %2218  ;;  %v2103_v35 = vld [vmem:[%s2840_s12 + $0x68] sm:$0xff] }
 0xdcb   : > { %v1341_v40 = vmul.f32 %v2219_v39, %v2213_v21  ;;  %1690 = vmatpush.bf16.msrb.mxu2 %v2103_v35  ;;  %v2100_v39 = vld [vmem:[%s2840_s12 + $0x50] sm:$0xff] }
 0xdcd   : > { %v1342_v34 = vpack.c.bf16 %v1341_v40, %v1341_v40  ;;  %v2099_v40 = vld [vmem:[%s2840_s12 + $0x48] sm:$0xff] }
 0xdcf   : > { %1691 = vmatpush.bf16.msrb.mxu2 %v2102_v36 }
 0xdd3   : > { %v1455_v38 = vpop.xlane.xlu2 %1454 }
 0xdd4   : > { %2220 = vrcp.f32 %v1455_v38  ;;  %v2101_v38 = vld [vmem:[%s2840_s12 + $0x58] sm:$0xff] }
 0xdd5   : > { %1692 = vmatpush.bf16.msrb.mxu2 %v2101_v38 }
 0xdd9   : > { %1693 = vmatpush.bf16.msrb.mxu2 %v2100_v39 }
 0xdda   : > { %v2221_v45 = vpop.eup %2220 }
 0xddb   : > { %v1344_v41 = vpop.permute.xlu1 %1343  ;;  %v1460_v42 = vpop.permute.xlu2 %1459  ;;  %v1457_v46 = vmul.f32 %v2221_v45, %v2215_v25 }
 0xddc   : > { %v1349_v43 = vsel %vm768_vm5, %v1344_v41, 0  ;;  %v1465_v44 = vsel %vm768_vm5, %v1460_v42, 0  ;;  %v2098_v41 = vld [vmem:[%s2840_s12 + $0x40] sm:$0xff] }
 0xddd   : > { %1358 = vmatpush.bf16.msra.mxu0 %v1349_v43  ;;  %v1458_v47 = vpack.c.bf16 %v1457_v46, %v1457_v46  ;;  %1694 = vmatpush.bf16.msrb.mxu2 %v2099_v40  ;;  %v2178_v42 = vld [vmem:[%s2839_s11 + $0x1] ss:$0 sm:$0xff] }
 0xde0   : > { %1972 = vmatmul.msk.bf16.vlgmr.msra.gmra.mxu0 %vm726_vm6, %v1342_v34 }
 0xde1   : > { %1474 = vmatpush.bf16.msrb.mxu0 %v1465_v44  ;;  %1695 = vmatpush.bf16.msrb.mxu2 %v2098_v41 }
 0xdf0   : > { %1976 = vmatmul.msk.bf16.vlgmr.msrb.gmra.mxu0 %vm726_vm6, %v1458_v47 }
 0xe3d   : > { %v1397_v37 = vpop.xlane.xlu1 %1396 }
 0xe3e   : > { %2222 = vrcp.f32 %v1397_v37 }
 0xe44   : > { %v2223_v48 = vpop.eup %2222 }
 0xe45   : > { %v1399_v49 = vmul.f32 %v2223_v48, %v2217_v33 }
 0xe47   : > { %v1400_v50 = vpack.c.bf16 %v1399_v49, %v1399_v49 }
 0xe49   : > { %1974 = vmatmul.msk.bf16.vlgmr.msra.gmra.mxu3 %vm726_vm6, %v1400_v50 }
 0xe5d   : > { %v1360_v52 = vpop.f32.mrf.mxu0 }
 0xe5e   : > { %1481 = vrot.lane.b32.xlu0 %v1360_v52, %s2901_s26 }
 0xe65   : > { %v1362_v53 = vpop.f32.mrf.mxu0 }
 0xe6d   : > { %v1476_v54 = vpop.f32.mrf.mxu0 }
 0xe6e   : > { %1489 = vrot.lane.b32.xlu0 %v1476_v54, %s2902_s29  ;;  %s629_s29 = sand.u32 1, %s2286_s22  }
 0xe6f   : > { %s630_s1 = scalar_lea.vmem [#allocation2], %s629_s29  ;;  %s1807_s26 = scalar_lea.sflag [#allocation3], %s629_s29 }
 0xe70   : > { %s1817_s23 = sshll.u32 %s630_s1, 4  ;;  %s1818_s23 = int_to_ptr.vmem [resolvable:$true] %s1817_s23 }
 0xe75   : > { %v1478_v55 = vpop.f32.mrf.mxu0 }
 0xe76   : > { %v2179_v55 = vld [vmem:[%s2841_s13 + $0x1] ss:$0 sm:$0xff] }
 0xecc   : > { %v1418_v57 = vpop.f32.mrf.mxu3 }
 0xecd   : > { %1485 = vrot.lane.b32.xlu2 %v1418_v57, %s2903_s21  ;;  %s1815_s21 = scalar_lea.hbm %s2848_s20, %s2437_s2 }
 0xece   : > { %s1819_s3 = sshll.u32 %s1815_s21, 4  ;;  %s1820_s3 = int_to_ptr.hbm [resolvable:$true] %s1819_s3 }
 0xecf   : > { %s2246_s5 = sshra.s32 %s1820_s3, 4  ;;  %s2247_s5 = int_to_ptr.hbm [resolvable:$true] %s2246_s5 }
 0xed0   : > { %v1482_v60 = vpop.permute.xlu0 %1481  ;;  %s2248_s6 = scalar_lea.hbm %s2247_s5, 1  ;;  %p2253_p0 = scmp.lt.s32.totalorder %s2247_s5, %s2848_s20 }
 0xed1   : > { %v1492_v61 = vsel %vm726_vm6, %v2684_v12, %v1482_v60  ;;  %p2249_p11 = scmp.ne.s32.totalorder %s2247_s5, %s2248_s6  ;;  %p2254_p1 = scmp.lt.s32.totalorder %s2252_s27, %s2248_s6 }
 0xed3   : > { %p2250_p12 = pnand %p2249_p11, %p2454_p5  ;;  %p2255_p2 = por %p2254_p1, %p2253_p0 }
 0xed4   : > { %v1420_v58 = vpop.f32.mrf.mxu3 }
 0xed5   : > { %p2251_p13 = pneg %p2250_p12 }
 0xed7   : > { %p2256_p3 = pnand %p2255_p2, %p2251_p13 }
 0xee0   : > { %v1490_v63 = vpop.permute.xlu0 %1489 }
 0xf27   : > { %v1486_v62 = vpop.permute.xlu2 %1485 }
 0xf28   : > { %v1493_v0 = vsel %vm972_vm7, %v1492_v61, %v1486_v62 }
 0xf29   : > { %v1494_v1 = vsel %vm974_vm8, %v1493_v0, %v1490_v63 }
 0xf2a   : > { %v1495_v2 = vpack.c.bf16 %v1494_v1, %v1494_v1 }
 0xf2c   : > { %1990 = vmatmul.msk.bf16.vlgmr.msrb.gmra.mxu1 %vm645_vm0, %v1495_v2  ;;  %v2107_v2 = vld [vmem:[%s2844_s16 + $0x8] sm:$0xff] }
 0xf2d   : > { %1763 = vmatpush.bf16.msra.mxu0 %v2107_v2 }
 0xfa9   : > { %v1530_v4 = vpop.f32.mrf.mxu1 }
 0xfaa   : > { %v1531_v5 = vadd.f32 %v2175_v3, %v1530_v4  ;;  %v2106_v3 = vld [vmem:[%s2844_s16] sm:$0xff] }
 0xfab   : > { %1764 = vmatpush.bf16.msra.mxu0 %v2106_v3 }
 0xfac   : > { %v1534_v7 = vadd.f32 %v1531_v5, %v2639_v26  ;;  %v2096_v26 = vld [vmem:[%s2838_s10 + $0x10] sm:$0xff] }
 0xfad   : > { %1602 = vmatpush.bf16.msrb.mxu3 %v2096_v26 }
 0xfae   : > { %v1539_v9 = vsel %vm645_vm0, %v1534_v7, 0.0 }
 0xfaf   : > { %1540 = vadd.xlane.f32.xlu1 %v1539_v9 }
 0xfb1   : > { %v1532_v10 = vpop.f32.mrf.mxu1 }
0x1022   : > { %v1541_v11 = vpop.xlane.xlu1 %1540 }
0x1023   : > { %v1542_v12 = vmul.f32 %v1541_v11, %v2473_v8 }
0x1025   : > { %v1543_v13 = vsub.f32 %v1534_v7, %v1542_v12 }
0x1027   : > { %v1544_v14 = vmul.f32 %v1543_v13, %v1543_v13 }
0x1029   : > { %v1545_v15 = vsel %vm645_vm0, %v1544_v14, 0.0 }
0x102a   : > { %1546 = vadd.xlane.f32.xlu2 %v1545_v15  ;;  %v2180_v15 = vld [vmem:[%s2842_s14 + $0x1] ss:$0 sm:$0xff] }
0x109d   : > { %v1547_v17 = vpop.xlane.xlu2 %1546 }
0x109e   : > { %v1548_v18 = vmul.f32 %v1547_v17, %v2473_v8 }
0x10a0   : > { %v1549_v20 = vadd.f32 1e-12, %v1548_v18 }
0x10a2   : > { %2224 = vrsqrt.f32 %v1549_v20  ;;  %vm1556_vm1 = vweird.f32 %v1549_v20 }
0x10a8   : > { %v2225_v21 = vpop.eup %2224 }
0x10a9   : > { %v1551_v22 = vmul.f32 %v2225_v21, %v1549_v20  ;;  %vm1557_vm15 = vweird.f32 %v2225_v21  ;;  %v2108_v20 = vld [vmem:[%s2846_s18] sm:$0xff] }
0x10aa   : > { %vm1558_vm2 = vmor %vm1556_vm1, %vm1557_vm15  ;;  %1799 = vmatpush.bf16.msra.mxu1 %v2108_v20 }
0x10ab   : > { %v1552_v30 = vmul.f32 %v2225_v21, %v1551_v22 }
0x10ad   : > { %v1553_v23 = vmul.f32 0.5, %v1552_v30 }
0x10af   : > { %v1554_v24 = vsub.f32 1.5, %v1553_v23 }
0x10b1   : > { %v1555_v25 = vmul.f32 %v2225_v21, %v1554_v24 }
0x10b3   : > { %v1559_v28 = vsel %vm1558_vm2, %v2225_v21, %v1555_v25  ;;  %v1741_v21 = vld [vmem:[%s2845_s17] sm:$0x1] }
0x10b4   : > { %v1560_v29 = vmul.f32 %v1559_v28, %v1543_v13 }
0x10b6   : > { %v1564_v31 = vmul.f32 %v2176_v27, %v1560_v29  ;;  %v1776_v27 = vld [vmem:[%s2847_s19] sm:$0x1] }
0x10b8   : > { %v1568_v32 = vadd.f32 %v2177_v51, %v1564_v31 }
0x10ba   : > { %v1569_v33 = vpack.c.bf16 %v1568_v32, %v1568_v32 }
0x10bc   : > { %2006 = vmatmul.msk.bf16.vlgmr.msrb.gmra.mxu3 %vm645_vm0, %v1569_v33 }
0x113f   : > { %v1604_v43 = vpop.f32.mrf.mxu3 }
0x1140   : > { %v1605_v44 = vadd.f32 %v2178_v42, %v1604_v43 }
0x1142   : > { %v1609_v34 = vmul.f32 0.044715, %v1605_v44  ;;  %v1608_v50 = vmul.f32 0.5, %v1605_v44 }
0x1144   : > { %v1610_v45 = vmul.f32 %v1609_v34, %v1605_v44 }
0x1146   : > { %v1611_v46 = vmul.f32 %v1610_v45, %v1605_v44 }
0x1147   : > { %v1606_v47 = vpop.f32.mrf.mxu3 }
0x1148   : > { %v1612_v37 = vadd.f32 %v1611_v46, %v1605_v44 }
0x114a   : > { %v1613_v48 = vmul.f32 0.7978846, %v1612_v37 }
0x114c   : > { %2226 = vtanh.f32 %v1613_v48 }
0x1152   : > { %v2227_v49 = vpop.eup %2226 }
0x1153   : > { %v1615_v52 = vadd.f32 1.0, %v2227_v49 }
0x1155   : > { %v1616_v53 = vmul.f32 %v1615_v52, %v1608_v50 }
0x1157   : > { %v1617_v54 = vpack.c.bf16 %v1616_v53, %v1616_v53 }
0x1159   : > { %1696 = vmatmul.bf16.vlgmr.msrb.gmra.mxu2 %v1617_v54 }
0x11dc   : > { %v1697_v56 = vpop.f32.mrf.mxu2 }
0x11dd   : > { %v1698_v57 = vadd.f32 %v2179_v55, %v1697_v56 }
0x11df   : > { %v1701_v58 = vadd.f32 %v1698_v57, %v1568_v32 }
0x11e1   : > { %v1706_v59 = vsel %vm645_vm0, %v1701_v58, 0.0 }
0x11e2   : > { %1707 = vadd.xlane.f32.xlu0 %v1706_v59 }
0x11e4   : > { %v1699_v60 = vpop.f32.mrf.mxu2 }
0x1255   : > { %v1708_v61 = vpop.xlane.xlu0 %1707 }
0x1256   : > { %v1709_v62 = vmul.f32 %v1708_v61, %v2473_v8 }
0x1258   : > { %v1710_v63 = vsub.f32 %v1701_v58, %v1709_v62 }
0x125a   : > { %v1711_v0 = vmul.f32 %v1710_v63, %v1710_v63 }
0x125c   : > { %v1712_v1 = vsel %vm645_vm0, %v1711_v0, 0.0 }
0x125d   : > { %1713 = vadd.xlane.f32.xlu1 %v1712_v1 }
0x12d0   : > { %v1714_v4 = vpop.xlane.xlu1 %1713 }
0x12d1   : > { %v1715_v5 = vmul.f32 %v1714_v4, %v2473_v8  ;;  %v2181_v8 = vld [vmem:[%s2843_s15 + $0x1] ss:$0 sm:$0xff] }
0x12d3   : > { %v1716_v7 = vadd.f32 1e-12, %v1715_v5 }
0x12d5   : > { %2228 = vrsqrt.f32 %v1716_v7  ;;  %vm1723_vm4 = vweird.f32 %v1716_v7 }
0x12db   : > { %v2229_v9 = vpop.eup %2228 }
0x12dc   : > { %v1718_v10 = vmul.f32 %v2229_v9, %v1716_v7  ;;  %vm1724_vm3 = vweird.f32 %v2229_v9 }
0x12dd   : > { %vm1725_vm5 = vmor %vm1723_vm4, %vm1724_vm3 }
0x12de   : > { %v1719_v11 = vmul.f32 %v2229_v9, %v1718_v10 }
0x12e0   : > { %v1720_v12 = vmul.f32 0.5, %v1719_v11 }
0x12e2   : > { %v1721_v13 = vsub.f32 1.5, %v1720_v12 }
0x12e4   : > { %v1722_v14 = vmul.f32 %v2229_v9, %v1721_v13 }
0x12e6   : > { %v1726_v16 = vsel %vm1725_vm5, %v2229_v9, %v1722_v14 }
0x12e7   : > { %v1727_v26 = vmul.f32 %v1726_v16, %v1710_v63 }
0x12e9   : > { %v1731_v6 = vmul.f32 %v2180_v15, %v1727_v26 }
0x12eb   : > { %v1735_v17 = vadd.f32 %v2181_v8, %v1731_v6 }
0x12ed   : > { %v1736_v18 = vpack.c.bf16 %v1735_v17, %v1735_v17 }
0x12ef   : > { %2066 = vmatmul.msk.bf16.vlgmr.msra.gmra.mxu0 %vm645_vm0, %v1736_v18 }
0x136c   : > { %v1766_v22 = vpop.f32.mrf.mxu0 }
0x136d   : > { %v1767_v30 = vadd.f32 %v1766_v22, %v1741_v21 }
0x136f   : > { %2230 = vtanh.f32 %v1767_v30 }
0x1374   : > { %v1768_v23 = vpop.f32.mrf.mxu0 }
0x1375   : > { %v2231_v24 = vpop.eup %2230 }
0x1376   : > { %v1771_v25 = vpack.c.bf16 %v2231_v24, %v2231_v24 }
0x1378   : > { %2075 = vmatmul.msk.bf16.vlgmr.msra.gmra.mxu1 %vm645_vm0, %v1771_v25 }
0x13f5   : > { %v1801_v28 = vpop.f32.mrf.mxu1 }
0x13f6   : > { %v1802_v51 = vadd.f32 %v1801_v28, %v1776_v27 }
0x13f8   : > { %1805 = vst [vmem:[%s630_s1] sm:$0x1] %v1802_v51 }
0x13f9   : > { %2259 = shalt.err (!%p2256_p3)
}
0x13fa   : > { %2110 = dma.vmem_to_hbm [thread:$0]  (%p2454_p5), %s1818_s23, 16, %s1820_s3, %s1807_s26  }
0x13fd   : > { %v1803_v29 = vpop.f32.mrf.mxu1 }
0x13fe PF: > { %s2904_s29 = sld [smem:[#allocation5_spill]]  ;;  %p2116_p4 = scmp.ge.s32.totalorder %s2294_s24, 2 }
0x1400   : > { %p2113_p7 = pnand %p2116_p4, %p2458_p6 }
0x1402   : > { %p2114_p8 = pneg %p2113_p7 }
0x1404   : > { %s1831_s1 = sand.u32 1, %s2904_s29  }
0x1405   : > { %s1832_s2 = scalar_lea.sflag [#allocation3], %s1831_s1 }
0x1406   : > { %2277 = dma.done.wait (%p2114_p8), %s1832_s2, 16  }
0x1407   : > { %2279 = vsyncadd (%p2114_p8), %s1832_s2, 4294967280  ;;  %s2906_s24 = sld [smem:[#allocation7_spill]]  ;;  %s2909_s1 = smov %s2286_s22 }
0x1408   : > { %s2907_s5 = sld [smem:[#allocation6_spill]] }
0x1409   : > { %s2908_s23 = sld [smem:[#allocation8_spill]] }
0x140d   : > { %p30_p9 = scmp.ge.s32.totalorder %s2906_s24, 4  }
0x140e   : > { %s2910_s22 = smov %s2907_s5 }
0x140f   :  { %32 = sbr.rel (!%p30_p9) target bundleno = 11 (0xb), region = 150 }
0x1414   :  { %1837 = vsyncpa [#allocation3], 1 }
0x1415   :  { %1839 = vsyncpa [#allocation3 + $0x1], 1 }

</bundles_post_ra>
